<compile_context>
chip_gen: v7x
topology: tpu7x:2x2x1
jax: 0.10.0
libtpu: 0.0.40
codegen_flags: <defaults>
</compile_context>

<pallas_src>
import functools

import jax
import jax.numpy as jnp
from jax.experimental import pallas as pl
from jax.experimental.pallas import tpu as pltpu

LEAKY_SLOPE = 0.01              # nn.LeakyReLU() default
BN_EPS = 1e-5                   # nn.BatchNorm2d default
LANE = 128                      # pad channel dim to a multiple of the lane width
TILE_M = 256                    # rows (of N*H*W) per grid step
VMEM_LIMIT = 32 * 1024 * 1024   # fits v5e (16 MiB default scoped) .. v7x (64 MiB phys)
# Set to jnp.bfloat16 on v6e/v7x for ~2x MXU throughput and half the DMA traffic
# (loosen the validation tolerance accordingly); f32 keeps the check tight here.
MATMUL_DTYPE = jnp.float32


def _round_up(x, m):
    return (x + m - 1) // m * m


# --------------------------- kernels ---------------------------

def _mm_stats_kernel(x_ref, w_ref, y_ref, sum_ref, sq_ref):
    """1x1-conv tile: y = x @ w; accumulate per-channel sum / sum-of-squares."""
    @pl.when(pl.program_id(0) == 0)
    def _init():
        sum_ref[...] = jnp.zeros_like(sum_ref)
        sq_ref[...] = jnp.zeros_like(sq_ref)

    y = jnp.dot(x_ref[...], w_ref[...], preferred_element_type=jnp.float32)
    y_ref[...] = y
    sum_ref[...] += jnp.sum(y, axis=0, keepdims=True)
    sq_ref[...] += jnp.sum(y * y, axis=0, keepdims=True)


def _conv3x3_stats_kernel(r0_ref, r1_ref, r2_ref, w_ref, y_ref, sum_ref, sq_ref,
                          *, out_w):
    """3x3 conv for one output row: build (W, 9*Cin) patches from three padded
    input rows in-register, one MXU matmul, accumulate per-channel stats."""
    @pl.when(jnp.logical_and(pl.program_id(0) == 0, pl.program_id(1) == 0))
    def _init():
        sum_ref[...] = jnp.zeros_like(sum_ref)
        sq_ref[...] = jnp.zeros_like(sq_ref)

    rows = (r0_ref[...], r1_ref[...], r2_ref[...])          # each (W+2, Cin)
    patch = jnp.concatenate(
        [rows[dy][dx:dx + out_w, :] for dy in range(3) for dx in range(3)],
        axis=-1)                                            # (W, 9*Cin) — matches HWIO flatten
    y = jnp.dot(patch, w_ref[...], preferred_element_type=jnp.float32)
    y_ref[...] = y
    sum_ref[...] += jnp.sum(y, axis=0, keepdims=True)
    sq_ref[...] += jnp.sum(y * y, axis=0, keepdims=True)


def _bn_leaky_kernel(y_ref, scale_ref, shift_ref, o_ref):
    z = y_ref[...] * scale_ref[...] + shift_ref[...]
    o_ref[...] = jnp.where(z >= 0, z, LEAKY_SLOPE * z)


# --------------------------- per-stage wrappers ---------------------------

def _conv1x1_stats(x_flat, wmat):
    """x_flat (M, Cin), wmat (Cin, Cp) -> y (Mp, Cp), sum (1, Cp), sumsq (1, Cp)."""
    m, cin = x_flat.shape
    cp = wmat.shape[1]
    mp = _round_up(m, TILE_M)
    if mp != m:
        x_flat = jnp.pad(x_flat, ((0, mp - m), (0, 0)))     # zero rows add 0 to stats
    y, s, sq = pl.pallas_call(
        _mm_stats_kernel,
        grid=(mp // TILE_M,),
        in_specs=[pl.BlockSpec((TILE_M, cin), lambda i: (i, 0)),
                  pl.BlockSpec((cin, cp), lambda i: (0, 0))],
        out_specs=[pl.BlockSpec((TILE_M, cp), lambda i: (i, 0)),
                   pl.BlockSpec((1, cp), lambda i: (0, 0)),
                   pl.BlockSpec((1, cp), lambda i: (0, 0))],
        out_shape=[jax.ShapeDtypeStruct((mp, cp), jnp.float32),
                   jax.ShapeDtypeStruct((1, cp), jnp.float32),
                   jax.ShapeDtypeStruct((1, cp), jnp.float32)],
        compiler_params=pltpu.CompilerParams(
            dimension_semantics=("arbitrary",),   # stats accumulate across M tiles
            vmem_limit_bytes=VMEM_LIMIT),
    )(x_flat.astype(MATMUL_DTYPE), wmat.astype(MATMUL_DTYPE))
    return y, s, sq


def _conv3x3_stats(x_nhwc, w_hwio_p):
    """3x3 stride-1 pad-1 conv + channel stats, no host-side im2col."""
    n, h, w, cin = x_nhwc.shape
    cp = w_hwio_p.shape[-1]
    xp = jnp.pad(x_nhwc, ((0, 0), (1, 1), (1, 1), (0, 0)))  # (N, H+2, W+2, Cin)
    wp = w + 2
    wmat = w_hwio_p.reshape(9 * cin, cp)
    xc = xp.astype(MATMUL_DTYPE)

    def row_spec(dy):
        # size-1 H block => block index == element row index, so h+dy selects
        # the dy-th padded row feeding output row h (overlap without im2col).
        return pl.BlockSpec((None, None, wp, cin),
                            lambda ni, hi, dy=dy: (ni, hi + dy, 0, 0))

    kernel = functools.partial(_conv3x3_stats_kernel, out_w=w)
    y, s, sq = pl.pallas_call(
        kernel,
        grid=(n, h),
        in_specs=[row_spec(0), row_spec(1), row_spec(2),
                  pl.BlockSpec((9 * cin, cp), lambda ni, hi: (0, 0))],
        out_specs=[pl.BlockSpec((None, None, w, cp), lambda ni, hi: (ni, hi, 0, 0)),
                   pl.BlockSpec((1, cp), lambda ni, hi: (0, 0)),
                   pl.BlockSpec((1, cp), lambda ni, hi: (0, 0))],
        out_shape=[jax.ShapeDtypeStruct((n, h, w, cp), jnp.float32),
                   jax.ShapeDtypeStruct((1, cp), jnp.float32),
                   jax.ShapeDtypeStruct((1, cp), jnp.float32)],
        compiler_params=pltpu.CompilerParams(
            dimension_semantics=("arbitrary", "arbitrary"),  # stats accumulate over both
            vmem_limit_bytes=VMEM_LIMIT),
    )(xc, xc, xc, wmat.astype(MATMUL_DTYPE))
    return y.reshape(n * h * w, cp), s, sq


def _bn_leaky_apply(y_flat, scale, shift, m_true):
    """Elementwise normalize + LeakyReLU over M tiles ("parallel" grid axis)."""
    m, cp = y_flat.shape
    mp = _round_up(m, TILE_M)
    if mp != m:
        y_flat = jnp.pad(y_flat, ((0, mp - m), (0, 0)))
    out = pl.pallas_call(
        _bn_leaky_kernel,
        grid=(mp // TILE_M,),
        in_specs=[pl.BlockSpec((TILE_M, cp), lambda i: (i, 0)),
                  pl.BlockSpec((1, cp), lambda i: (0, 0)),
                  pl.BlockSpec((1, cp), lambda i: (0, 0))],
        out_specs=pl.BlockSpec((TILE_M, cp), lambda i: (i, 0)),
        out_shape=jax.ShapeDtypeStruct((mp, cp), jnp.float32),
        compiler_params=pltpu.CompilerParams(
            dimension_semantics=("parallel",),
            vmem_limit_bytes=VMEM_LIMIT),
    )(y_flat, scale.reshape(1, cp).astype(jnp.float32),
      shift.reshape(1, cp).astype(jnp.float32))
    return out[:m_true]


def _conv_bn_leaky_stage(x_nhwc, w_hwio, gamma, beta):
    """One Conv -> BN(train) -> LeakyReLU stage.

    x_nhwc may carry lane-padded (exactly-zero) channels from the previous
    stage; the weight Cin axis is zero-padded to match.  Returns the NHWC
    activation with Cout padded to a multiple of 128 plus the true Cout.
    """
    n, h, w, cin_x = x_nhwc.shape
    kh, kw, cin_w, cout = w_hwio.shape
    assert (kh, kw) in ((1, 1), (3, 3)), "con_bn_leak_5set only uses 1x1 / 3x3"
    cp = _round_up(cout, LANE)
    w_p = jnp.pad(w_hwio, ((0, 0), (0, 0), (0, cin_x - cin_w), (0, cp - cout)))
    gamma_p = jnp.pad(gamma, (0, cp - cout))
    beta_p = jnp.pad(beta, (0, cp - cout))
    m_true = n * h * w

    if kh == 1:
        y_flat, s, sq = _conv1x1_stats(x_nhwc.reshape(m_true, cin_x),
                                       w_p.reshape(cin_x, cp))
    else:
        y_flat, s, sq = _conv3x3_stats(x_nhwc, w_p)

    # Per-channel batch statistics from the single-pass sums (biased variance,
    # as PyTorch BN uses for normalization).  Slightly less numerically stable
    # than two-pass; fine in f32 at these magnitudes.
    mean = s[0] / m_true
    var = jnp.maximum(sq[0] / m_true - mean * mean, 0.0)
    scale = gamma_p * jax.lax.rsqrt(var + BN_EPS)
    shift = beta_p - mean * scale   # padded channels: scale=shift=0 -> stay zero

    out_flat = _bn_leaky_apply(y_flat, scale, shift, m_true)
    return out_flat.reshape(n, h, w, cp), cout


# --------------------------- module-level forward ---------------------------

def init_params(key, in_ch, out_ch):
    """Deterministic parameters for the 5 con_bn_leaky stages.

    Stage configs (k, cin, cout) mirror con_bn_leak_5set.__init__; padding is
    derived statically from k ((k-1)//2), so it is never a traced value.
    """
    cfgs = [
        (1, in_ch, out_ch),
        (3, out_ch, out_ch),
        (1, out_ch, out_ch * 2),
        (3, out_ch * 2, out_ch * 2),
        (1, out_ch * 2, out_ch),
    ]
    params = []
    for i, (k, cin, cout) in enumerate(cfgs):
        kw_, kb = jax.random.split(jax.random.fold_in(key, i))
        fan_in = cin * k * k
        w = jax.random.normal(kw_, (k, k, cin, cout), jnp.float32) / jnp.sqrt(fan_in)
        # Conv bias is kept for parity with the PyTorch module but is unused by
        # the kernels: training-mode BN subtracts the batch mean, cancelling it.
        b = 0.01 * jax.random.normal(kb, (cout,), jnp.float32)
        params.append(dict(w=w, b=b,
                           gamma=jnp.ones((cout,), jnp.float32),   # BN default init
                           beta=jnp.zeros((cout,), jnp.float32)))
    return params


@jax.jit
def con_bn_leak_5set_forward(x_nchw, params):
    # layout: NCHW in -> NHWC internally -> NCHW out (matches PyTorch output).
    x = jnp.transpose(x_nchw, (0, 2, 3, 1))
    true_c = x.shape[-1]
    for p in params:
        x, true_c = _conv_bn_leaky_stage(x, p["w"], p["gamma"], p["beta"])
    return jnp.transpose(x[..., :true_c], (0, 3, 1, 2))


# --------------------------- pure-JAX reference ---------------------------

def _reference_forward(x_nchw, params):
    x = jnp.transpose(x_nchw, (0, 2, 3, 1))  # NHWC
    for p in params:
        k = p["w"].shape[0]
        pad = (k - 1) // 2
        y = jax.lax.conv_general_dilated(
            x, p["w"], window_strides=(1, 1),
            padding=[(pad, pad), (pad, pad)],
            dimension_numbers=("NHWC", "HWIO", "NHWC"),
            precision=jax.lax.Precision.HIGHEST,
        ) + p["b"]
        mean = jnp.mean(y, axis=(0, 1, 2), keepdims=True)
        var = jnp.mean((y - mean) ** 2, axis=(0, 1, 2), keepdims=True)
        z = p["gamma"] * (y - mean) * jax.lax.rsqrt(var + BN_EPS) + p["beta"]
        x = jnp.where(z >= 0, z, LEAKY_SLOPE * z)
    return jnp.transpose(x, (0, 3, 1, 2))


if __name__ == "__main__":
    key = jax.random.PRNGKey(0)
    in_ch, out_ch = 4, 8
    x = jax.random.normal(jax.random.fold_in(key, 100), (2, in_ch, 16, 16), jnp.float32)

    params = init_params(key, in_ch, out_ch)

    out = jax.block_until_ready(con_bn_leak_5set_forward(x, params))
    ref = _reference_forward(x, params)

    assert out.shape == (2, out_ch, 16, 16), out.shape
    max_err = float(jnp.max(jnp.abs(out - ref)))
    assert jnp.allclose(out, ref, atol=2e-3, rtol=2e-3), max_err

    print("KERNEL_OK")
</pallas_src>

<mosaic_0001>
module attributes {stable_mosaic.version = 11 : i64} {
  func.func @_mm_stats_kernel(%arg0: i32, %arg1: memref<256x4xf32, #tpu.memory_space<vmem>>, %arg2: memref<4x128xf32, #tpu.memory_space<vmem>>, %arg3: memref<256x128xf32, #tpu.memory_space<vmem>>, %arg4: memref<1x128xf32, #tpu.memory_space<vmem>>, %arg5: memref<1x128xf32, #tpu.memory_space<vmem>>) attributes {dimension_semantics = [#tpu.dimension_semantics<arbitrary>], iteration_bounds = array<i64: 2>, scalar_prefetch = 0 : i64, scratch_operands = 0 : i64, tpu.core_type = #tpu.core_type<tc>, window_params = [{transform_indices = @transform_0, window_bounds = array<i64: 256, 4>}, {pipeline_mode = #tpu.pipeline_mode<synchronous>, transform_indices = @transform_1, window_bounds = array<i64: 4, 128>}, {transform_indices = @transform_2, window_bounds = array<i64: 256, 128>}, {pipeline_mode = #tpu.pipeline_mode<synchronous>, transform_indices = @transform_3, window_bounds = array<i64: 1, 128>}, {pipeline_mode = #tpu.pipeline_mode<synchronous>, transform_indices = @transform_4, window_bounds = array<i64: 1, 128>}]} {
    %c0_i32 = arith.constant 0 : i32
    %0 = arith.cmpi eq, %arg0, %c0_i32 : i32
    %1 = arith.extui %0 : i1 to i32
    %c0_i32_0 = arith.constant 0 : i32
    %2 = arith.cmpi ne, %1, %c0_i32_0 : i32
    scf.if %2 {
      %cst_16 = arith.constant 0.000000e+00 : f32
      %18 = vector.broadcast %cst_16 : f32 to vector<1x128xf32>
      %c0_17 = arith.constant 0 : index
      %c0_18 = arith.constant 0 : index
      %19 = vector.load %arg4[%c0_17, %c0_18] : memref<1x128xf32, #tpu.memory_space<vmem>>, vector<1x128xf32>
      tpu.vector_store %arg4[%c0_17, %c0_18], %18 {strides = array<i32>} : memref<1x128xf32, #tpu.memory_space<vmem>>, vector<1x128xf32>,
      %cst_19 = arith.constant 0.000000e+00 : f32
      %20 = vector.broadcast %cst_19 : f32 to vector<1x128xf32>
      %c0_20 = arith.constant 0 : index
      %c0_21 = arith.constant 0 : index
      %21 = vector.load %arg5[%c0_20, %c0_21] : memref<1x128xf32, #tpu.memory_space<vmem>>, vector<1x128xf32>
      tpu.vector_store %arg5[%c0_20, %c0_21], %20 {strides = array<i32>} : memref<1x128xf32, #tpu.memory_space<vmem>>, vector<1x128xf32>,
    } else {
    }
    %c0 = arith.constant 0 : index
    %c0_1 = arith.constant 0 : index
    %3 = vector.load %arg1[%c0, %c0_1] : memref<256x4xf32, #tpu.memory_space<vmem>>, vector<256x4xf32>
    %c0_2 = arith.constant 0 : index
    %c0_3 = arith.constant 0 : index
    %4 = vector.load %arg2[%c0_2, %c0_3] : memref<4x128xf32, #tpu.memory_space<vmem>>, vector<4x128xf32>
    %cst = arith.constant dense<0.000000e+00> : vector<256x128xf32>
    %5 = tpu.matmul %3, %4, %cst {dimension_numbers = #tpu.dot_dimension_numbers<[1], [0], [0], [1], [0, 0, 1, 1], [], []>} : vector<256x4xf32>, vector<4x128xf32>, vector<256x128xf32> -> vector<256x128xf32>
    %c0_4 = arith.constant 0 : index
    %c0_5 = arith.constant 0 : index
    %6 = vector.load %arg3[%c0_4, %c0_5] : memref<256x128xf32, #tpu.memory_space<vmem>>, vector<256x128xf32>
    tpu.vector_store %arg3[%c0_4, %c0_5], %5 {strides = array<i32>} : memref<256x128xf32, #tpu.memory_space<vmem>>, vector<256x128xf32>,
    %c0_6 = arith.constant 0 : index
    %c0_7 = arith.constant 0 : index
    %7 = vector.load %arg4[%c0_6, %c0_7] : memref<1x128xf32, #tpu.memory_space<vmem>>, vector<1x128xf32>
    %cst_8 = arith.constant dense<0.000000e+00> : vector<128xf32>
    %8 = vector.multi_reduction <add>, %5, %cst_8 [0] : vector<256x128xf32> to vector<128xf32>
    %9 = vector.shape_cast %8 : vector<128xf32> to vector<1x128xf32>
    %10 = arith.addf %7, %9 : vector<1x128xf32>
    %c0_9 = arith.constant 0 : index
    %c0_10 = arith.constant 0 : index
    %11 = vector.load %arg4[%c0_9, %c0_10] : memref<1x128xf32, #tpu.memory_space<vmem>>, vector<1x128xf32>
    tpu.vector_store %arg4[%c0_9, %c0_10], %10 {strides = array<i32>} : memref<1x128xf32, #tpu.memory_space<vmem>>, vector<1x128xf32>,
    %c0_11 = arith.constant 0 : index
    %c0_12 = arith.constant 0 : index
    %12 = vector.load %arg5[%c0_11, %c0_12] : memref<1x128xf32, #tpu.memory_space<vmem>>, vector<1x128xf32>
    %13 = arith.mulf %5, %5 : vector<256x128xf32>
    %cst_13 = arith.constant dense<0.000000e+00> : vector<128xf32>
    %14 = vector.multi_reduction <add>, %13, %cst_13 [0] : vector<256x128xf32> to vector<128xf32>
    %15 = vector.shape_cast %14 : vector<128xf32> to vector<1x128xf32>
    %16 = arith.addf %12, %15 : vector<1x128xf32>
    %c0_14 = arith.constant 0 : index
    %c0_15 = arith.constant 0 : index
    %17 = vector.load %arg5[%c0_14, %c0_15] : memref<1x128xf32, #tpu.memory_space<vmem>>, vector<1x128xf32>
    tpu.vector_store %arg5[%c0_14, %c0_15], %16 {strides = array<i32>} : memref<1x128xf32, #tpu.memory_space<vmem>>, vector<1x128xf32>,
    return
  }
  func.func @transform_0(%arg0: i32) -> (i32, i32) {
    %c0_i32 = arith.constant 0 : i32
    %c0_i32_0 = arith.constant 0 : i32
    return %arg0, %c0_i32 : i32, i32
  }
  func.func @transform_1(%arg0: i32) -> (i32, i32) {
    %c0_i32 = arith.constant 0 : i32
    %c0_i32_0 = arith.constant 0 : i32
    %c0_i32_1 = arith.constant 0 : i32
    return %c0_i32, %c0_i32_0 : i32, i32
  }
  func.func @transform_2(%arg0: i32) -> (i32, i32) {
    %c0_i32 = arith.constant 0 : i32
    %c0_i32_0 = arith.constant 0 : i32
    return %arg0, %c0_i32 : i32, i32
  }
  func.func @transform_3(%arg0: i32) -> (i32, i32) {
    %c0_i32 = arith.constant 0 : i32
    %c0_i32_0 = arith.constant 0 : i32
    %c0_i32_1 = arith.constant 0 : i32
    return %c0_i32, %c0_i32_0 : i32, i32
  }
  func.func @transform_4(%arg0: i32) -> (i32, i32) {
    %c0_i32 = arith.constant 0 : i32
    %c0_i32_0 = arith.constant 0 : i32
    %c0_i32_1 = arith.constant 0 : i32
    return %c0_i32, %c0_i32_0 : i32, i32
  }
}

module attributes {stable_mosaic.version = 11 : i64} {
  func.func @_bn_leaky_kernel(%arg0: i32, %arg1: memref<256x128xf32, #tpu.memory_space<vmem>>, %arg2: memref<1x128xf32, #tpu.memory_space<vmem>>, %arg3: memref<1x128xf32, #tpu.memory_space<vmem>>, %arg4: memref<256x128xf32, #tpu.memory_space<vmem>>) attributes {dimension_semantics = [#tpu.dimension_semantics<parallel>], iteration_bounds = array<i64: 2>, scalar_prefetch = 0 : i64, scratch_operands = 0 : i64, tpu.core_type = #tpu.core_type<tc>, window_params = [{transform_indices = @transform_0, window_bounds = array<i64: 256, 128>}, {pipeline_mode = #tpu.pipeline_mode<synchronous>, transform_indices = @transform_1, window_bounds = array<i64: 1, 128>}, {pipeline_mode = #tpu.pipeline_mode<synchronous>, transform_indices = @transform_2, window_bounds = array<i64: 1, 128>}, {transform_indices = @transform_3, window_bounds = array<i64: 256, 128>}]} {
    %c0 = arith.constant 0 : index
    %c0_0 = arith.constant 0 : index
    %0 = vector.load %arg1[%c0, %c0_0] : memref<256x128xf32, #tpu.memory_space<vmem>>, vector<256x128xf32>
    %c0_1 = arith.constant 0 : index
    %c0_2 = arith.constant 0 : index
    %1 = vector.load %arg2[%c0_1, %c0_2] : memref<1x128xf32, #tpu.memory_space<vmem>>, vector<1x128xf32>
    %2 = vector.broadcast %1 : vector<1x128xf32> to vector<256x128xf32>
    %3 = arith.mulf %0, %2 : vector<256x128xf32>
    %c0_3 = arith.constant 0 : index
    %c0_4 = arith.constant 0 : index
    %4 = vector.load %arg3[%c0_3, %c0_4] : memref<1x128xf32, #tpu.memory_space<vmem>>, vector<1x128xf32>
    %5 = vector.broadcast %4 : vector<1x128xf32> to vector<256x128xf32>
    %6 = arith.addf %3, %5 : vector<256x128xf32>
    %cst = arith.constant 0.000000e+00 : f32
    %7 = vector.broadcast %cst : f32 to vector<256x128xf32>
    %8 = arith.cmpf oge, %6, %7 : vector<256x128xf32>
    %cst_5 = arith.constant 0.00999999977 : f32
    %9 = vector.broadcast %cst_5 : f32 to vector<256x128xf32>
    %10 = arith.mulf %9, %6 : vector<256x128xf32>
    %11 = arith.select %8, %6, %10 : vector<256x128xi1>, vector<256x128xf32>
    %c0_6 = arith.constant 0 : index
    %c0_7 = arith.constant 0 : index
    %12 = vector.load %arg4[%c0_6, %c0_7] : memref<256x128xf32, #tpu.memory_space<vmem>>, vector<256x128xf32>
    tpu.vector_store %arg4[%c0_6, %c0_7], %11 {strides = array<i32>} : memref<256x128xf32, #tpu.memory_space<vmem>>, vector<256x128xf32>,
    return
  }
  func.func @transform_0(%arg0: i32) -> (i32, i32) {
    %c0_i32 = arith.constant 0 : i32
    %c0_i32_0 = arith.constant 0 : i32
    return %arg0, %c0_i32 : i32, i32
  }
  func.func @transform_1(%arg0: i32) -> (i32, i32) {
    %c0_i32 = arith.constant 0 : i32
    %c0_i32_0 = arith.constant 0 : i32
    %c0_i32_1 = arith.constant 0 : i32
    return %c0_i32, %c0_i32_0 : i32, i32
  }
  func.func @transform_2(%arg0: i32) -> (i32, i32) {
    %c0_i32 = arith.constant 0 : i32
    %c0_i32_0 = arith.constant 0 : i32
    %c0_i32_1 = arith.constant 0 : i32
    return %c0_i32, %c0_i32_0 : i32, i32
  }
  func.func @transform_3(%arg0: i32) -> (i32, i32) {
    %c0_i32 = arith.constant 0 : i32
    %c0_i32_0 = arith.constant 0 : i32
    return %arg0, %c0_i32 : i32, i32
  }
}

module attributes {stable_mosaic.version = 11 : i64} {
  func.func @_conv3x3_stats_kernel(%arg0: i32, %arg1: i32, %arg2: memref<1x1x18x128xf32, #tpu.memory_space<vmem>>, %arg3: memref<1x1x18x128xf32, #tpu.memory_space<vmem>>, %arg4: memref<1x1x18x128xf32, #tpu.memory_space<vmem>>, %arg5: memref<1152x128xf32, #tpu.memory_space<vmem>>, %arg6: memref<1x1x16x128xf32, #tpu.memory_space<vmem>>, %arg7: memref<1x128xf32, #tpu.memory_space<vmem>>, %arg8: memref<1x128xf32, #tpu.memory_space<vmem>>) attributes {dimension_semantics = [#tpu.dimension_semantics<arbitrary>, #tpu.dimension_semantics<arbitrary>], iteration_bounds = array<i64: 2, 16>, scalar_prefetch = 0 : i64, scratch_operands = 0 : i64, tpu.core_type = #tpu.core_type<tc>, window_params = [{transform_indices = @transform_0, window_bounds = array<i64: 1, 1, 18, 128>}, {transform_indices = @transform_1, window_bounds = array<i64: 1, 1, 18, 128>}, {transform_indices = @transform_2, window_bounds = array<i64: 1, 1, 18, 128>}, {pipeline_mode = #tpu.pipeline_mode<synchronous>, transform_indices = @transform_3, window_bounds = array<i64: 1152, 128>}, {transform_indices = @transform_4, window_bounds = array<i64: 1, 1, 16, 128>}, {pipeline_mode = #tpu.pipeline_mode<synchronous>, transform_indices = @transform_5, window_bounds = array<i64: 1, 128>}, {pipeline_mode = #tpu.pipeline_mode<synchronous>, transform_indices = @transform_6, window_bounds = array<i64: 1, 128>}]} {
    %c0_i32 = arith.constant 0 : i32
    %0 = arith.cmpi eq, %arg0, %c0_i32 : i32
    %c0_i32_0 = arith.constant 0 : i32
    %1 = arith.cmpi eq, %arg1, %c0_i32_0 : i32
    %2 = arith.andi %0, %1 : i1
    %3 = arith.extui %2 : i1 to i32
    %c0_i32_1 = arith.constant 0 : i32
    %4 = arith.cmpi ne, %3, %c0_i32_1 : i32
    scf.if %4 {
      %cst_29 = arith.constant 0.000000e+00 : f32
      %37 = vector.broadcast %cst_29 : f32 to vector<1x128xf32>
      %c0_30 = arith.constant 0 : index
      %c0_31 = arith.constant 0 : index
      %38 = vector.load %arg7[%c0_30, %c0_31] : memref<1x128xf32, #tpu.memory_space<vmem>>, vector<1x128xf32>
      tpu.vector_store %arg7[%c0_30, %c0_31], %37 {strides = array<i32>} : memref<1x128xf32, #tpu.memory_space<vmem>>, vector<1x128xf32>,
      %cst_32 = arith.constant 0.000000e+00 : f32
      %39 = vector.broadcast %cst_32 : f32 to vector<1x128xf32>
      %c0_33 = arith.constant 0 : index
      %c0_34 = arith.constant 0 : index
      %40 = vector.load %arg8[%c0_33, %c0_34] : memref<1x128xf32, #tpu.memory_space<vmem>>, vector<1x128xf32>
      tpu.vector_store %arg8[%c0_33, %c0_34], %39 {strides = array<i32>} : memref<1x128xf32, #tpu.memory_space<vmem>>, vector<1x128xf32>,
    } else {
    }
    %c0 = arith.constant 0 : index
    %c0_2 = arith.constant 0 : index
    %c0_3 = arith.constant 0 : index
    %c0_4 = arith.constant 0 : index
    %5 = vector.load %arg2[%c0, %c0_2, %c0_3, %c0_4] : memref<1x1x18x128xf32, #tpu.memory_space<vmem>>, vector<1x1x18x128xf32>
    %6 = vector.shape_cast %5 : vector<1x1x18x128xf32> to vector<18x128xf32>
    %c0_5 = arith.constant 0 : index
    %c0_6 = arith.constant 0 : index
    %c0_7 = arith.constant 0 : index
    %c0_8 = arith.constant 0 : index
    %7 = vector.load %arg3[%c0_5, %c0_6, %c0_7, %c0_8] : memref<1x1x18x128xf32, #tpu.memory_space<vmem>>, vector<1x1x18x128xf32>
    %8 = vector.shape_cast %7 : vector<1x1x18x128xf32> to vector<18x128xf32>
    %c0_9 = arith.constant 0 : index
    %c0_10 = arith.constant 0 : index
    %c0_11 = arith.constant 0 : index
    %c0_12 = arith.constant 0 : index
    %9 = vector.load %arg4[%c0_9, %c0_10, %c0_11, %c0_12] : memref<1x1x18x128xf32, #tpu.memory_space<vmem>>, vector<1x1x18x128xf32>
    %10 = vector.shape_cast %9 : vector<1x1x18x128xf32> to vector<18x128xf32>
    %11 = vector.extract_strided_slice %6 {offsets = [0, 0], sizes = [16, 128], strides = [1, 1]} : vector<18x128xf32> to vector<16x128xf32>
    %12 = vector.extract_strided_slice %6 {offsets = [1, 0], sizes = [16, 128], strides = [1, 1]} : vector<18x128xf32> to vector<16x128xf32>
    %13 = vector.extract_strided_slice %6 {offsets = [2, 0], sizes = [16, 128], strides = [1, 1]} : vector<18x128xf32> to vector<16x128xf32>
    %14 = vector.extract_strided_slice %8 {offsets = [0, 0], sizes = [16, 128], strides = [1, 1]} : vector<18x128xf32> to vector<16x128xf32>
    %15 = vector.extract_strided_slice %8 {offsets = [1, 0], sizes = [16, 128], strides = [1, 1]} : vector<18x128xf32> to vector<16x128xf32>
    %16 = vector.extract_strided_slice %8 {offsets = [2, 0], sizes = [16, 128], strides = [1, 1]} : vector<18x128xf32> to vector<16x128xf32>
    %17 = vector.extract_strided_slice %10 {offsets = [0, 0], sizes = [16, 128], strides = [1, 1]} : vector<18x128xf32> to vector<16x128xf32>
    %18 = vector.extract_strided_slice %10 {offsets = [1, 0], sizes = [16, 128], strides = [1, 1]} : vector<18x128xf32> to vector<16x128xf32>
    %19 = vector.extract_strided_slice %10 {offsets = [2, 0], sizes = [16, 128], strides = [1, 1]} : vector<18x128xf32> to vector<16x128xf32>
    %20 = tpu.concatenate %11, %12, %13, %14, %15, %16, %17, %18, %19 in 1 : vector<16x128xf32>, vector<16x128xf32>, vector<16x128xf32>, vector<16x128xf32>, vector<16x128xf32>, vector<16x128xf32>, vector<16x128xf32>, vector<16x128xf32>, vector<16x128xf32> -> vector<16x1152xf32>
    %c0_13 = arith.constant 0 : index
    %c0_14 = arith.constant 0 : index
    %21 = vector.load %arg5[%c0_13, %c0_14] : memref<1152x128xf32, #tpu.memory_space<vmem>>, vector<1152x128xf32>
    %cst = arith.constant dense<0.000000e+00> : vector<16x128xf32>
    %22 = tpu.matmul %20, %21, %cst {dimension_numbers = #tpu.dot_dimension_numbers<[1], [0], [0], [1], [0, 0, 1, 1], [], []>} : vector<16x1152xf32>, vector<1152x128xf32>, vector<16x128xf32> -> vector<16x128xf32>
    %c0_15 = arith.constant 0 : index
    %c0_16 = arith.constant 0 : index
    %c0_17 = arith.constant 0 : index
    %c0_18 = arith.constant 0 : index
    %23 = vector.load %arg6[%c0_15, %c0_16, %c0_17, %c0_18] : memref<1x1x16x128xf32, #tpu.memory_space<vmem>>, vector<1x1x16x128xf32>
    %24 = vector.shape_cast %23 : vector<1x1x16x128xf32> to vector<16x128xf32>
    %25 = vector.shape_cast %22 : vector<16x128xf32> to vector<1x1x16x128xf32>
    tpu.vector_store %arg6[%c0_15, %c0_16, %c0_17, %c0_18], %25 {strides = array<i32>} : memref<1x1x16x128xf32, #tpu.memory_space<vmem>>, vector<1x1x16x128xf32>,
    %c0_19 = arith.constant 0 : index
    %c0_20 = arith.constant 0 : index
    %26 = vector.load %arg7[%c0_19, %c0_20] : memref<1x128xf32, #tpu.memory_space<vmem>>, vector<1x128xf32>
    %cst_21 = arith.constant dense<0.000000e+00> : vector<128xf32>
    %27 = vector.multi_reduction <add>, %22, %cst_21 [0] : vector<16x128xf32> to vector<128xf32>
    %28 = vector.shape_cast %27 : vector<128xf32> to vector<1x128xf32>
    %29 = arith.addf %26, %28 : vector<1x128xf32>
    %c0_22 = arith.constant 0 : index
    %c0_23 = arith.constant 0 : index
    %30 = vector.load %arg7[%c0_22, %c0_23] : memref<1x128xf32, #tpu.memory_space<vmem>>, vector<1x128xf32>
    tpu.vector_store %arg7[%c0_22, %c0_23], %29 {strides = array<i32>} : memref<1x128xf32, #tpu.memory_space<vmem>>, vector<1x128xf32>,
    %c0_24 = arith.constant 0 : index
    %c0_25 = arith.constant 0 : index
    %31 = vector.load %arg8[%c0_24, %c0_25] : memref<1x128xf32, #tpu.memory_space<vmem>>, vector<1x128xf32>
    %32 = arith.mulf %22, %22 : vector<16x128xf32>
    %cst_26 = arith.constant dense<0.000000e+00> : vector<128xf32>
    %33 = vector.multi_reduction <add>, %32, %cst_26 [0] : vector<16x128xf32> to vector<128xf32>
    %34 = vector.shape_cast %33 : vector<128xf32> to vector<1x128xf32>
    %35 = arith.addf %31, %34 : vector<1x128xf32>
    %c0_27 = arith.constant 0 : index
    %c0_28 = arith.constant 0 : index
    %36 = vector.load %arg8[%c0_27, %c0_28] : memref<1x128xf32, #tpu.memory_space<vmem>>, vector<1x128xf32>
    tpu.vector_store %arg8[%c0_27, %c0_28], %35 {strides = array<i32>} : memref<1x128xf32, #tpu.memory_space<vmem>>, vector<1x128xf32>,
    return
  }
  func.func @transform_0(%arg0: i32, %arg1: i32) -> (i32, i32, i32, i32) {
    %c0_i32 = arith.constant 0 : i32
    %0 = arith.addi %arg1, %c0_i32 : i32
    %c0_i32_0 = arith.constant 0 : i32
    %c0_i32_1 = arith.constant 0 : i32
    %c0_i32_2 = arith.constant 0 : i32
    return %arg0, %0, %c0_i32_0, %c0_i32_1 : i32, i32, i32, i32
  }
  func.func @transform_1(%arg0: i32, %arg1: i32) -> (i32, i32, i32, i32) {
    %c1_i32 = arith.constant 1 : i32
    %0 = arith.addi %arg1, %c1_i32 : i32
    %c0_i32 = arith.constant 0 : i32
    %c0_i32_0 = arith.constant 0 : i32
    %c0_i32_1 = arith.constant 0 : i32
    return %arg0, %0, %c0_i32, %c0_i32_0 : i32, i32, i32, i32
  }
  func.func @transform_2(%arg0: i32, %arg1: i32) -> (i32, i32, i32, i32) {
    %c2_i32 = arith.constant 2 : i32
    %0 = arith.addi %arg1, %c2_i32 : i32
    %c0_i32 = arith.constant 0 : i32
    %c0_i32_0 = arith.constant 0 : i32
    %c0_i32_1 = arith.constant 0 : i32
    return %arg0, %0, %c0_i32, %c0_i32_0 : i32, i32, i32, i32
  }
  func.func @transform_3(%arg0: i32, %arg1: i32) -> (i32, i32) {
    %c0_i32 = arith.constant 0 : i32
    %c0_i32_0 = arith.constant 0 : i32
    %c0_i32_1 = arith.constant 0 : i32
    return %c0_i32, %c0_i32_0 : i32, i32
  }
  func.func @transform_4(%arg0: i32, %arg1: i32) -> (i32, i32, i32, i32) {
    %c0_i32 = arith.constant 0 : i32
    %c0_i32_0 = arith.constant 0 : i32
    %c0_i32_1 = arith.constant 0 : i32
    return %arg0, %arg1, %c0_i32, %c0_i32_0 : i32, i32, i32, i32
  }
  func.func @transform_5(%arg0: i32, %arg1: i32) -> (i32, i32) {
    %c0_i32 = arith.constant 0 : i32
    %c0_i32_0 = arith.constant 0 : i32
    %c0_i32_1 = arith.constant 0 : i32
    return %c0_i32, %c0_i32_0 : i32, i32
  }
  func.func @transform_6(%arg0: i32, %arg1: i32) -> (i32, i32) {
    %c0_i32 = arith.constant 0 : i32
    %c0_i32_0 = arith.constant 0 : i32
    %c0_i32_1 = arith.constant 0 : i32
    return %c0_i32, %c0_i32_0 : i32, i32
  }
}

module attributes {stable_mosaic.version = 11 : i64} {
  func.func @_mm_stats_kernel(%arg0: i32, %arg1: memref<256x128xf32, #tpu.memory_space<vmem>>, %arg2: memref<128x128xf32, #tpu.memory_space<vmem>>, %arg3: memref<256x128xf32, #tpu.memory_space<vmem>>, %arg4: memref<1x128xf32, #tpu.memory_space<vmem>>, %arg5: memref<1x128xf32, #tpu.memory_space<vmem>>) attributes {dimension_semantics = [#tpu.dimension_semantics<arbitrary>], iteration_bounds = array<i64: 2>, scalar_prefetch = 0 : i64, scratch_operands = 0 : i64, tpu.core_type = #tpu.core_type<tc>, window_params = [{transform_indices = @transform_0, window_bounds = array<i64: 256, 128>}, {pipeline_mode = #tpu.pipeline_mode<synchronous>, transform_indices = @transform_1, window_bounds = array<i64: 128, 128>}, {transform_indices = @transform_2, window_bounds = array<i64: 256, 128>}, {pipeline_mode = #tpu.pipeline_mode<synchronous>, transform_indices = @transform_3, window_bounds = array<i64: 1, 128>}, {pipeline_mode = #tpu.pipeline_mode<synchronous>, transform_indices = @transform_4, window_bounds = array<i64: 1, 128>}]} {
    %c0_i32 = arith.constant 0 : i32
    %0 = arith.cmpi eq, %arg0, %c0_i32 : i32
    %1 = arith.extui %0 : i1 to i32
    %c0_i32_0 = arith.constant 0 : i32
    %2 = arith.cmpi ne, %1, %c0_i32_0 : i32
    scf.if %2 {
      %cst_16 = arith.constant 0.000000e+00 : f32
      %18 = vector.broadcast %cst_16 : f32 to vector<1x128xf32>
      %c0_17 = arith.constant 0 : index
      %c0_18 = arith.constant 0 : index
      %19 = vector.load %arg4[%c0_17, %c0_18] : memref<1x128xf32, #tpu.memory_space<vmem>>, vector<1x128xf32>
      tpu.vector_store %arg4[%c0_17, %c0_18], %18 {strides = array<i32>} : memref<1x128xf32, #tpu.memory_space<vmem>>, vector<1x128xf32>,
      %cst_19 = arith.constant 0.000000e+00 : f32
      %20 = vector.broadcast %cst_19 : f32 to vector<1x128xf32>
      %c0_20 = arith.constant 0 : index
      %c0_21 = arith.constant 0 : index
      %21 = vector.load %arg5[%c0_20, %c0_21] : memref<1x128xf32, #tpu.memory_space<vmem>>, vector<1x128xf32>
      tpu.vector_store %arg5[%c0_20, %c0_21], %20 {strides = array<i32>} : memref<1x128xf32, #tpu.memory_space<vmem>>, vector<1x128xf32>,
    } else {
    }
    %c0 = arith.constant 0 : index
    %c0_1 = arith.constant 0 : index
    %3 = vector.load %arg1[%c0, %c0_1] : memref<256x128xf32, #tpu.memory_space<vmem>>, vector<256x128xf32>
    %c0_2 = arith.constant 0 : index
    %c0_3 = arith.constant 0 : index
    %4 = vector.load %arg2[%c0_2, %c0_3] : memref<128x128xf32, #tpu.memory_space<vmem>>, vector<128x128xf32>
    %cst = arith.constant dense<0.000000e+00> : vector<256x128xf32>
    %5 = tpu.matmul %3, %4, %cst {dimension_numbers = #tpu.dot_dimension_numbers<[1], [0], [0], [1], [0, 0, 1, 1], [], []>} : vector<256x128xf32>, vector<128x128xf32>, vector<256x128xf32> -> vector<256x128xf32>
    %c0_4 = arith.constant 0 : index
    %c0_5 = arith.constant 0 : index
    %6 = vector.load %arg3[%c0_4, %c0_5] : memref<256x128xf32, #tpu.memory_space<vmem>>, vector<256x128xf32>
    tpu.vector_store %arg3[%c0_4, %c0_5], %5 {strides = array<i32>} : memref<256x128xf32, #tpu.memory_space<vmem>>, vector<256x128xf32>,
    %c0_6 = arith.constant 0 : index
    %c0_7 = arith.constant 0 : index
    %7 = vector.load %arg4[%c0_6, %c0_7] : memref<1x128xf32, #tpu.memory_space<vmem>>, vector<1x128xf32>
    %cst_8 = arith.constant dense<0.000000e+00> : vector<128xf32>
    %8 = vector.multi_reduction <add>, %5, %cst_8 [0] : vector<256x128xf32> to vector<128xf32>
    %9 = vector.shape_cast %8 : vector<128xf32> to vector<1x128xf32>
    %10 = arith.addf %7, %9 : vector<1x128xf32>
    %c0_9 = arith.constant 0 : index
    %c0_10 = arith.constant 0 : index
    %11 = vector.load %arg4[%c0_9, %c0_10] : memref<1x128xf32, #tpu.memory_space<vmem>>, vector<1x128xf32>
    tpu.vector_store %arg4[%c0_9, %c0_10], %10 {strides = array<i32>} : memref<1x128xf32, #tpu.memory_space<vmem>>, vector<1x128xf32>,
    %c0_11 = arith.constant 0 : index
    %c0_12 = arith.constant 0 : index
    %12 = vector.load %arg5[%c0_11, %c0_12] : memref<1x128xf32, #tpu.memory_space<vmem>>, vector<1x128xf32>
    %13 = arith.mulf %5, %5 : vector<256x128xf32>
    %cst_13 = arith.constant dense<0.000000e+00> : vector<128xf32>
    %14 = vector.multi_reduction <add>, %13, %cst_13 [0] : vector<256x128xf32> to vector<128xf32>
    %15 = vector.shape_cast %14 : vector<128xf32> to vector<1x128xf32>
    %16 = arith.addf %12, %15 : vector<1x128xf32>
    %c0_14 = arith.constant 0 : index
    %c0_15 = arith.constant 0 : index
    %17 = vector.load %arg5[%c0_14, %c0_15] : memref<1x128xf32, #tpu.memory_space<vmem>>, vector<1x128xf32>
    tpu.vector_store %arg5[%c0_14, %c0_15], %16 {strides = array<i32>} : memref<1x128xf32, #tpu.memory_space<vmem>>, vector<1x128xf32>,
    return
  }
  func.func @transform_0(%arg0: i32) -> (i32, i32) {
    %c0_i32 = arith.constant 0 : i32
    %c0_i32_0 = arith.constant 0 : i32
    return %arg0, %c0_i32 : i32, i32
  }
  func.func @transform_1(%arg0: i32) -> (i32, i32) {
    %c0_i32 = arith.constant 0 : i32
    %c0_i32_0 = arith.constant 0 : i32
    %c0_i32_1 = arith.constant 0 : i32
    return %c0_i32, %c0_i32_0 : i32, i32
  }
  func.func @transform_2(%arg0: i32) -> (i32, i32) {
    %c0_i32 = arith.constant 0 : i32
    %c0_i32_0 = arith.constant 0 : i32
    return %arg0, %c0_i32 : i32, i32
  }
  func.func @transform_3(%arg0: i32) -> (i32, i32) {
    %c0_i32 = arith.constant 0 : i32
    %c0_i32_0 = arith.constant 0 : i32
    %c0_i32_1 = arith.constant 0 : i32
    return %c0_i32, %c0_i32_0 : i32, i32
  }
  func.func @transform_4(%arg0: i32) -> (i32, i32) {
    %c0_i32 = arith.constant 0 : i32
    %c0_i32_0 = arith.constant 0 : i32
    %c0_i32_1 = arith.constant 0 : i32
    return %c0_i32, %c0_i32_0 : i32, i32
  }
}

</mosaic_0001>

<bundles_post_ra>
// kernel: con_bn_leak_5set_forward.10
= control target key start
LH: loop header
LB: loop body
LE: loop exit
PB: predicated region body
PF: predicated region fallthrough
CT: control target
= control target key end

     0   :  { %s946_s15 = smov 0   ;;  %s1150_s0 = inlined_call_operand.vmem [shape: f32[512,4], index: 0, kind: input, shape index: {}]   ;;  %s1151_s1 = inlined_call_operand.vmem [shape: f32[4,128], index: 1, kind: input, shape index: {}]   ;;  %s1152_s2 = inlined_call_operand.vmem [shape: f32[512,128], index: 2, kind: output, shape index: {0}]   ;;  %s1153_s3 = inlined_call_operand.vmem [shape: f32[1,128], index: 3, kind: output, shape index: {1}]   ;;  %s1154_s4 = inlined_call_operand.vmem [shape: f32[1,128], index: 4, kind: output, shape index: {2}]  }
   0x1 LB: > { %s773_s16 = sadd.s32 4294967295, %s918_s15   ;;  %p777_p0 = scmp.ge.s32.totalorder %s918_s15, 1  ;;  %s918_s15 = sphi %s946_s15, %s15_s15  }
   0x2   : > { %p158_p1 = scmp.lt.s32.totalorder %s918_s15, 3 }
   0x4   : > { %p159_p2 = pnand %p777_p0, %p158_p1 }
   0x5   : > { %s778_s17 = sshll.u32 (!%p159_p2), %s773_s16, 5  ;;  %p782_p4 = scmp.ne.s32.totalorder (!%p159_p2), %s773_s16, 0 }
   0x6   : > { %162 = sbr.rel (%p159_p2) target bundleno = 317 (0x13d), region = 28  ;;  %p185_p3 = scmp.lt.s32.totalorder (!%p159_p2), %s778_s17, 63 }
   0xd   : > { %s1156_s17 = smov (!%p185_p3, %s778_s17), 63  ;;  %199 = sbr.rel (%p782_p4) target bundleno = 20 (0x14), region = 32 }
   0xe   : > { %s779_s18 = sshll.u32 %s1156_s17, 3  ;;  %v920_v0 = vmov (!%p782_p4), 0.0  }
   0xf   : > { %s957_s21 = scalar_lea.vmem %s1150_s0, %s779_s18  ;;  %s962_s24 = scalar_lea.vmem %s1152_s2, %s779_s18  ;;  %200 = vst [vmem:[%s1153_s3] sm:$0x1] (!%p782_p4), %v920_v0  ;;  %201 = vst [vmem:[%s1154_s4] sm:$0x1] (!%p782_p4), %v920_v0 }
  0x14 PF: > { %v234_v1 = vld [vmem:[%s1151_s1] sm:$0xf]  ;;  %vm332_vm0 = vcmask 1043456   ;;  %vm235_vm1 = vcmask 31744   ;;  %v203_v3 = vld [vmem:[%s957_s21 + $0x8] sm:$0xff]  ;;  %v204_v4 = vld [vmem:[%s957_s21 + $0x10] sm:$0xff] }
  0x15   : > { %v202_v2 = vld [vmem:[%s957_s21] sm:$0xff]  ;;  %851 = vmatprep.subr.msk.mxu0 %vm332_vm0, %v234_v1  ;;  %901 = vmatprep.subr.msk.mxu1 %vm332_vm0, %v234_v1  ;;  %v205_v5 = vld [vmem:[%s957_s21 + $0x18] sm:$0xff]  ;;  %v219_v8 = vld [vmem:[%s957_s21 + $0x88] sm:$0xff] }
  0x16   : > { %853 = vmatprep.mubr.msk.f32.mxu0 %vm235_vm1, %v202_v2  ;;  %852 = vmatpush3.msk.msra.mxu0 %vm332_vm0, %v234_v1  ;;  %v206_v6 = vld [vmem:[%s957_s21 + $0x20] sm:$0xff]  ;;  %v220_v9 = vld [vmem:[%s957_s21 + $0x90] sm:$0xff]  ;;  %v207_v10 = vld [vmem:[%s957_s21 + $0x28] sm:$0xff] }
  0x17   : > { %854 = vmatmul.mubr.msk.f32.vlgmr.msra.gmra.mrb[0].mxu0 %vm235_vm1, %v203_v3  ;;  %902 = vmatpush3.msk.msra.mxu1 %vm332_vm0, %v234_v1  ;;  %v218_v7 = vld [vmem:[%s957_s21 + $0x80] sm:$0xff]  ;;  %v221_v11 = vld [vmem:[%s957_s21 + $0x98] sm:$0xff]  ;;  %v208_v12 = vld [vmem:[%s957_s21 + $0x30] sm:$0xff] }
  0x18   : > { %856 = vmatprep.mubr.msk.f32.mxu0 %vm235_vm1, %v204_v4  ;;  %877 = vmatprep.mubr.msk.f32.mxu1 %vm235_vm1, %v218_v7  ;;  %v222_v13 = vld [vmem:[%s957_s21 + $0xa0] sm:$0xff]  ;;  %v209_v14 = vld [vmem:[%s957_s21 + $0x38] sm:$0xff]  ;;  %v223_v15 = vld [vmem:[%s957_s21 + $0xa8] sm:$0xff] }
  0x19   : > { %878 = vmatmul.mubr.msk.f32.vlgmr.msra.gmra.mrb[0].mxu1 %vm235_vm1, %v219_v8  ;;  %v210_v16 = vld [vmem:[%s957_s21 + $0x40] sm:$0xff]  ;;  %v224_v17 = vld [vmem:[%s957_s21 + $0xb0] sm:$0xff]  ;;  %v211_v18 = vld [vmem:[%s957_s21 + $0x48] sm:$0xff] }
  0x1a   : > { %880 = vmatprep.mubr.msk.f32.mxu1 %vm235_vm1, %v220_v9  ;;  %v225_v19 = vld [vmem:[%s957_s21 + $0xb8] sm:$0xff]  ;;  %v212_v20 = vld [vmem:[%s957_s21 + $0x50] sm:$0xff]  ;;  %v226_v21 = vld [vmem:[%s957_s21 + $0xc0] sm:$0xff] }
  0x1b   : > { %857 = vmatmul.mubr.msk.f32.gmra.mrb[2].mxu0 %vm235_vm1, %v205_v5  ;;  %v213_v22 = vld [vmem:[%s957_s21 + $0x58] sm:$0xff]  ;;  %v227_v23 = vld [vmem:[%s957_s21 + $0xc8] sm:$0xff]  ;;  %v214_v24 = vld [vmem:[%s957_s21 + $0x60] sm:$0xff] }
  0x1c   : > { %859 = vmatprep.mubr.msk.f32.mxu0 %vm235_vm1, %v206_v6  ;;  %v228_v25 = vld [vmem:[%s957_s21 + $0xd0] sm:$0xff]  ;;  %v215_v26 = vld [vmem:[%s957_s21 + $0x68] sm:$0xff]  ;;  %v229_v27 = vld [vmem:[%s957_s21 + $0xd8] sm:$0xff] }
  0x1d   : > { %881 = vmatmul.mubr.msk.f32.gmra.mrb[2].mxu1 %vm235_vm1, %v221_v11  ;;  %v216_v28 = vld [vmem:[%s957_s21 + $0x70] sm:$0xff]  ;;  %v230_v29 = vld [vmem:[%s957_s21 + $0xe0] sm:$0xff]  ;;  %v217_v30 = vld [vmem:[%s957_s21 + $0x78] sm:$0xff] }
  0x1e   : > { %883 = vmatprep.mubr.msk.f32.mxu1 %vm235_vm1, %v222_v13  ;;  %v231_v31 = vld [vmem:[%s957_s21 + $0xe8] sm:$0xff]  ;;  %v232_v32 = vld [vmem:[%s957_s21 + $0xf0] sm:$0xff]  ;;  %v233_v33 = vld [vmem:[%s957_s21 + $0xf8] sm:$0xff] }
  0x1f   : > { %860 = vmatmul.mubr.msk.f32.gmra.mrb[4].mxu0 %vm235_vm1, %v207_v10 }
  0x20   : > { %862 = vmatprep.mubr.msk.f32.mxu0 %vm235_vm1, %v208_v12 }
  0x21   : > { %884 = vmatmul.mubr.msk.f32.gmra.mrb[4].mxu1 %vm235_vm1, %v223_v15 }
  0x22   : > { %886 = vmatprep.mubr.msk.f32.mxu1 %vm235_vm1, %v224_v17 }
  0x23   : > { %863 = vmatmul.mubr.msk.f32.gmra.mrb[6].mxu0 %vm235_vm1, %v209_v14 }
  0x24   : > { %865 = vmatprep.mubr.msk.f32.mxu0 %vm235_vm1, %v210_v16 }
  0x25   : > { %887 = vmatmul.mubr.msk.f32.gmra.mrb[6].mxu1 %vm235_vm1, %v225_v19 }
  0x26   : > { %889 = vmatprep.mubr.msk.f32.mxu1 %vm235_vm1, %v226_v21 }
  0x27   : > { %866 = vmatmul.mubr.msk.f32.gmra.mrb[8].mxu0 %vm235_vm1, %v211_v18 }
  0x28   : > { %868 = vmatprep.mubr.msk.f32.mxu0 %vm235_vm1, %v212_v20 }
  0x29   : > { %890 = vmatmul.mubr.msk.f32.gmra.mrb[8].mxu1 %vm235_vm1, %v227_v23 }
  0x2a   : > { %892 = vmatprep.mubr.msk.f32.mxu1 %vm235_vm1, %v228_v25 }
  0x2b   : > { %869 = vmatmul.mubr.msk.f32.gmra.mrb[10].mxu0 %vm235_vm1, %v213_v22 }
  0x2c   : > { %871 = vmatprep.mubr.msk.f32.mxu0 %vm235_vm1, %v214_v24 }
  0x2d   : > { %893 = vmatmul.mubr.msk.f32.gmra.mrb[10].mxu1 %vm235_vm1, %v229_v27 }
  0x2e   : > { %895 = vmatprep.mubr.msk.f32.mxu1 %vm235_vm1, %v230_v29 }
  0x2f   : > { %872 = vmatmul.mubr.msk.f32.gmra.mrb[12].mxu0 %vm235_vm1, %v215_v26 }
  0x30   : > { %874 = vmatprep.mubr.msk.f32.mxu0 %vm235_vm1, %v216_v28 }
  0x31   : > { %896 = vmatmul.mubr.msk.f32.gmra.mrb[12].mxu1 %vm235_vm1, %v231_v31 }
  0x32   : > { %898 = vmatprep.mubr.msk.f32.mxu1 %vm235_vm1, %v232_v32 }
  0x33   : > { %875 = vmatmul.mubr.msk.f32.gmra.mrb[14].mxu0 %vm235_vm1, %v217_v30 }
  0x35   : > { %899 = vmatmul.mubr.msk.f32.gmra.mrb[14].mxu1 %vm235_vm1, %v233_v33 }
  0xea   : > { %v855_v34 = vpop.f32.mrb[0].mxu0 }
  0xeb   : > { %562 = vst [vmem:[%s962_s24 + $0x8] sm:$0xff] %v855_v34  ;;  %v635_v35 = vmul.f32 %v855_v34, %v855_v34  ;;  %v402_v36 = vpop.f32.mrb[1].mxu0 }
  0xec   : > { %561 = vst [vmem:[%s962_s24] sm:$0xff] %v402_v36  ;;  %v594_v37 = vadd.f32 %v855_v34, %v402_v36  ;;  %v634_v38 = vmul.f32 %v402_v36, %v402_v36  ;;  %v1039_v41 = vpop.f32.mrb[0].mxu1 }
  0xed   : > { %578 = vst [vmem:[%s962_s24 + $0x88] sm:$0xff] %v1039_v41  ;;  %v1044_v43 = vpop.f32.mrb[1].mxu1 }
  0xee   : > { %v666_v39 = vadd.f32 %v635_v35, %v634_v38  ;;  %v858_v40 = vpop.f32.mrb[2].mxu0  ;;  %577 = vst [vmem:[%s962_s24 + $0x80] sm:$0xff] %v1044_v43 }
  0xef   : > { %564 = vst [vmem:[%s962_s24 + $0x18] sm:$0xff] %v858_v40  ;;  %v412_v42 = vpop.f32.mrb[3].mxu0  ;;  %v637_v46 = vmul.f32 %v858_v40, %v858_v40 }
  0xf0   : > { %563 = vst [vmem:[%s962_s24 + $0x10] sm:$0xff] %v412_v42  ;;  %v595_v44 = vadd.f32 %v594_v37, %v412_v42  ;;  %v636_v45 = vmul.f32 %v412_v42, %v412_v42  ;;  %v1049_v50 = vpop.f32.mrb[2].mxu1 }
  0xf1   : > { %580 = vst [vmem:[%s962_s24 + $0x98] sm:$0xff] %v1049_v50  ;;  %v1054_v52 = vpop.f32.mrb[3].mxu1 }
  0xf2   : > { %v667_v47 = vadd.f32 %v666_v39, %v636_v45  ;;  %v861_v48 = vpop.f32.mrb[4].mxu0  ;;  %v596_v49 = vadd.f32 %v858_v40, %v595_v44  ;;  %579 = vst [vmem:[%s962_s24 + $0x90] sm:$0xff] %v1054_v52 }
  0xf3   : > { %566 = vst [vmem:[%s962_s24 + $0x28] sm:$0xff] %v861_v48  ;;  %v422_v51 = vpop.f32.mrb[5].mxu0  ;;  %v639_v56 = vmul.f32 %v861_v48, %v861_v48 }
  0xf4   : > { %565 = vst [vmem:[%s962_s24 + $0x20] sm:$0xff] %v422_v51  ;;  %v597_v53 = vadd.f32 %v596_v49, %v422_v51  ;;  %v638_v54 = vmul.f32 %v422_v51, %v422_v51  ;;  %v668_v55 = vadd.f32 %v667_v47, %v637_v46  ;;  %v1059_v60 = vpop.f32.mrb[4].mxu1  ;;  %v650_v47 = vmul.f32 %v1044_v43, %v1044_v43 }
  0xf5   : > { %582 = vst [vmem:[%s962_s24 + $0xa8] sm:$0xff] %v1059_v60  ;;  %v1064_v62 = vpop.f32.mrb[5].mxu1 }
  0xf6   : > { %v669_v57 = vadd.f32 %v668_v55, %v638_v54  ;;  %v864_v58 = vpop.f32.mrb[6].mxu0  ;;  %v598_v59 = vadd.f32 %v861_v48, %v597_v53  ;;  %581 = vst [vmem:[%s962_s24 + $0xa0] sm:$0xff] %v1064_v62  ;;  %v651_v54 = vmul.f32 %v1039_v41, %v1039_v41 }
  0xf7   : > { %568 = vst [vmem:[%s962_s24 + $0x38] sm:$0xff] %v864_v58  ;;  %v432_v61 = vpop.f32.mrb[7].mxu0  ;;  %v641_v2 = vmul.f32 %v864_v58, %v864_v58 }
  0xf8   : > { %567 = vst [vmem:[%s962_s24 + $0x30] sm:$0xff] %v432_v61  ;;  %v599_v63 = vadd.f32 %v598_v59, %v432_v61  ;;  %v640_v0 = vmul.f32 %v432_v61, %v432_v61  ;;  %v670_v1 = vadd.f32 %v669_v57, %v639_v56  ;;  %v1069_v6 = vpop.f32.mrb[6].mxu1  ;;  %v652_v57 = vmul.f32 %v1054_v52, %v1054_v52 }
  0xf9   : > { %584 = vst [vmem:[%s962_s24 + $0xb8] sm:$0xff] %v1069_v6  ;;  %v1074_v8 = vpop.f32.mrb[7].mxu1  ;;  %v653_v61 = vmul.f32 %v1049_v50, %v1049_v50 }
  0xfa   : > { %v671_v3 = vadd.f32 %v670_v1, %v640_v0  ;;  %v867_v4 = vpop.f32.mrb[8].mxu0  ;;  %v600_v5 = vadd.f32 %v864_v58, %v599_v63  ;;  %583 = vst [vmem:[%s962_s24 + $0xb0] sm:$0xff] %v1074_v8 }
  0xfb   : > { %570 = vst [vmem:[%s962_s24 + $0x48] sm:$0xff] %v867_v4  ;;  %v442_v7 = vpop.f32.mrb[9].mxu0  ;;  %v643_v12 = vmul.f32 %v867_v4, %v867_v4 }
  0xfc   : > { %569 = vst [vmem:[%s962_s24 + $0x40] sm:$0xff] %v442_v7  ;;  %v601_v9 = vadd.f32 %v600_v5, %v442_v7  ;;  %v642_v10 = vmul.f32 %v442_v7, %v442_v7  ;;  %v672_v11 = vadd.f32 %v671_v3, %v641_v2  ;;  %v1079_v16 = vpop.f32.mrb[8].mxu1 }
  0xfd   : > { %586 = vst [vmem:[%s962_s24 + $0xc8] sm:$0xff] %v1079_v16  ;;  %v1084_v18 = vpop.f32.mrb[9].mxu1 }
  0xfe   : > { %v673_v13 = vadd.f32 %v672_v11, %v642_v10  ;;  %v870_v14 = vpop.f32.mrb[10].mxu0  ;;  %v602_v15 = vadd.f32 %v867_v4, %v601_v9  ;;  %585 = vst [vmem:[%s962_s24 + $0xc0] sm:$0xff] %v1084_v18 }
  0xff   : > { %572 = vst [vmem:[%s962_s24 + $0x58] sm:$0xff] %v870_v14  ;;  %v452_v17 = vpop.f32.mrb[11].mxu0  ;;  %v645_v22 = vmul.f32 %v870_v14, %v870_v14 }
 0x100   : > { %571 = vst [vmem:[%s962_s24 + $0x50] sm:$0xff] %v452_v17  ;;  %v603_v19 = vadd.f32 %v602_v15, %v452_v17  ;;  %v644_v20 = vmul.f32 %v452_v17, %v452_v17  ;;  %v674_v21 = vadd.f32 %v673_v13, %v643_v12  ;;  %v1089_v26 = vpop.f32.mrb[10].mxu1 }
 0x101   : > { %588 = vst [vmem:[%s962_s24 + $0xd8] sm:$0xff] %v1089_v26  ;;  %v532_v28 = vpop.f32.mrb[11].mxu1 }
 0x102   : > { %v675_v23 = vadd.f32 %v674_v21, %v644_v20  ;;  %v873_v24 = vpop.f32.mrb[12].mxu0  ;;  %v604_v25 = vadd.f32 %v870_v14, %v603_v19  ;;  %587 = vst [vmem:[%s962_s24 + $0xd0] sm:$0xff] %v532_v28  ;;  %v661_v19 = vmul.f32 %v1089_v26, %v1089_v26 }
 0x103   : > { %574 = vst [vmem:[%s962_s24 + $0x68] sm:$0xff] %v873_v24  ;;  %v462_v27 = vpop.f32.mrb[13].mxu0  ;;  %v647_v32 = vmul.f32 %v873_v24, %v873_v24 }
 0x104   : > { %573 = vst [vmem:[%s962_s24 + $0x60] sm:$0xff] %v462_v27  ;;  %v605_v29 = vadd.f32 %v604_v25, %v462_v27  ;;  %v646_v30 = vmul.f32 %v462_v27, %v462_v27  ;;  %v676_v31 = vadd.f32 %v675_v23, %v645_v22  ;;  %v897_v36 = vpop.f32.mrb[12].mxu1 }
 0x105   : > { %590 = vst [vmem:[%s962_s24 + $0xe8] sm:$0xff] %v897_v36  ;;  %v542_v38 = vpop.f32.mrb[13].mxu1 }
 0x106   : > { %v677_v33 = vadd.f32 %v676_v31, %v646_v30  ;;  %v876_v34 = vpop.f32.mrb[14].mxu0  ;;  %v606_v35 = vadd.f32 %v873_v24, %v605_v29  ;;  %589 = vst [vmem:[%s962_s24 + $0xe0] sm:$0xff] %v542_v38  ;;  %v662_v21 = vmul.f32 %v542_v38, %v542_v38 }
 0x107   : > { %576 = vst [vmem:[%s962_s24 + $0x78] sm:$0xff] %v876_v34  ;;  %v472_v37 = vpop.f32.mrb[15].mxu0  ;;  %v649_v44 = vmul.f32 %v876_v34, %v876_v34 }
 0x108   : > { %575 = vst [vmem:[%s962_s24 + $0x70] sm:$0xff] %v472_v37  ;;  %v607_v39 = vadd.f32 %v606_v35, %v472_v37  ;;  %v648_v40 = vmul.f32 %v472_v37, %v472_v37  ;;  %v678_v42 = vadd.f32 %v677_v33, %v647_v32  ;;  %v900_v48 = vpop.f32.mrb[14].mxu1 }
 0x109   : > { %592 = vst [vmem:[%s962_s24 + $0xf8] sm:$0xff] %v900_v48  ;;  %v552_v49 = vpop.f32.mrb[15].mxu1  ;;  %v665_v31 = vmul.f32 %v900_v48, %v900_v48 }
 0x10a   : > { %v608_v45 = vadd.f32 %v876_v34, %v607_v39  ;;  %v679_v46 = vadd.f32 %v678_v42, %v648_v40  ;;  %591 = vst [vmem:[%s962_s24 + $0xf0] sm:$0xff] %v552_v49  ;;  %v664_v27 = vmul.f32 %v552_v49, %v552_v49 }
 0x10c   : > { %v680_v51 = vadd.f32 %v679_v46, %v649_v44  ;;  %v609_v53 = vadd.f32 %v608_v45, %v1044_v43  ;;  %v654_v43 = vmul.f32 %v1064_v62, %v1064_v62  ;;  %v633_v46 = vld [vmem:[%s1154_s4] sm:$0x1] }
 0x10e   : > { %v681_v55 = vadd.f32 %v680_v51, %v650_v47  ;;  %v610_v56 = vadd.f32 %v1039_v41, %v609_v53  ;;  %v655_v41 = vmul.f32 %v1059_v60, %v1059_v60 }
 0x110   : > { %v611_v58 = vadd.f32 %v610_v56, %v1054_v52  ;;  %v682_v59 = vadd.f32 %v681_v55, %v651_v54  ;;  %v656_v52 = vmul.f32 %v1074_v8, %v1074_v8 }
 0x112   : > { %v683_v63 = vadd.f32 %v682_v59, %v652_v57  ;;  %v612_v0 = vadd.f32 %v1049_v50, %v611_v58  ;;  %v657_v50 = vmul.f32 %v1069_v6, %v1069_v6 }
 0x114   : > { %v613_v1 = vadd.f32 %v612_v0, %v1064_v62  ;;  %v684_v2 = vadd.f32 %v683_v63, %v653_v61  ;;  %v658_v62 = vmul.f32 %v1084_v18, %v1084_v18 }
 0x116   : > { %v685_v3 = vadd.f32 %v684_v2, %v654_v43  ;;  %v614_v4 = vadd.f32 %v1059_v60, %v613_v1  ;;  %v659_v60 = vmul.f32 %v1079_v16, %v1079_v16 }
 0x118   : > { %v615_v5 = vadd.f32 %v614_v4, %v1074_v8  ;;  %v686_v7 = vadd.f32 %v685_v3, %v655_v41  ;;  %v660_v8 = vmul.f32 %v532_v28, %v532_v28 }
 0x11a   : > { %v687_v9 = vadd.f32 %v686_v7, %v656_v52  ;;  %v616_v10 = vadd.f32 %v1069_v6, %v615_v5 }
 0x11c   : > { %v617_v11 = vadd.f32 %v616_v10, %v1084_v18  ;;  %v688_v12 = vadd.f32 %v687_v9, %v657_v50  ;;  %v663_v18 = vmul.f32 %v897_v36, %v897_v36 }
 0x11e   : > { %v689_v13 = vadd.f32 %v688_v12, %v658_v62  ;;  %v618_v14 = vadd.f32 %v1079_v16, %v617_v11 }
 0x120   : > { %v619_v15 = vadd.f32 %v618_v14, %v532_v28  ;;  %v690_v17 = vadd.f32 %v689_v13, %v659_v60 }
 0x122   : > { %v691_v20 = vadd.f32 %v690_v17, %v660_v8  ;;  %v620_v6 = vadd.f32 %v1089_v26, %v619_v15 }
 0x124   : > { %v621_v22 = vadd.f32 %v620_v6, %v542_v38  ;;  %v692_v23 = vadd.f32 %v691_v20, %v661_v19 }
 0x126   : > { %v693_v24 = vadd.f32 %v692_v23, %v662_v21  ;;  %v622_v25 = vadd.f32 %v897_v36, %v621_v22  ;;  %v593_v36 = vld [vmem:[%s1153_s3] sm:$0x1] }
 0x128   : > { %v623_v29 = vadd.f32 %v622_v25, %v552_v49  ;;  %v694_v30 = vadd.f32 %v693_v24, %v663_v18 }
 0x12a   : > { %v624_v16 = vadd.f32 %v900_v48, %v623_v29  ;;  %v695_v32 = vadd.f32 %v694_v30, %v664_v27 }
 0x12c   : > { %v625_v28 = vrot.slane %v624_v16, 4  ;;  %v696_v33 = vadd.f32 %v695_v32, %v665_v31 }
 0x12e   : > { %v626_v34 = vadd.f32 %v625_v28, %v624_v16  ;;  %v697_v35 = vrot.slane %v696_v33, 4 }
 0x130   : > { %v627_v37 = vrot.slane %v626_v34, 2  ;;  %v698_v39 = vadd.f32 %v697_v35, %v696_v33 }
 0x132   : > { %v628_v40 = vadd.f32 %v627_v37, %v626_v34  ;;  %v699_v26 = vrot.slane %v698_v39, 2 }
 0x134   : > { %v629_v42 = vrot.slane %v628_v40, 1  ;;  %v700_v38 = vadd.f32 %v699_v26, %v698_v39 }
 0x136   : > { %v630_v44 = vadd.f32 %v629_v42, %v628_v40  ;;  %v701_v45 = vrot.slane %v700_v38, 1 }
 0x138   : > { %v631_v47 = vadd.f32 %v630_v44, %v593_v36  ;;  %v702_v48 = vadd.f32 %v701_v45, %v700_v38 }
 0x13a   : > { %632 = vst [vmem:[%s1153_s3] sm:$0x1] %v631_v47  ;;  %v703_v49 = vadd.f32 %v702_v48, %v633_v46 }
 0x13c   : > { %704 = vst [vmem:[%s1154_s4] sm:$0x1] %v703_v49 }
 0x13d PF: > { %s15_s15 = sadd.s32 1, %s918_s15  }
 0x13e   : > { %p12_p5 = scmp.ge.s32.totalorder %s15_s15, 4  }
 0x140   :  { %14 = sbr.rel (!%p12_p5) target bundleno = 1 (0x1), region = 78 }

// kernel: con_bn_leak_5set_forward.11
= control target key start
LH: loop header
LB: loop body
LE: loop exit
PB: predicated region body
PF: predicated region fallthrough
CT: control target
= control target key end

     0   :  { %s517_s12 = smov 0   ;;  %s679_s0 = inlined_call_operand.vmem [shape: f32[512,128], index: 0, kind: input, shape index: {}]   ;;  %s680_s1 = inlined_call_operand.vmem [shape: f32[1,128], index: 1, kind: input, shape index: {}]   ;;  %s681_s2 = inlined_call_operand.vmem [shape: f32[1,128], index: 2, kind: input, shape index: {}]   ;;  %s682_s3 = inlined_call_operand.vmem [shape: f32[512,128], index: 3, kind: output, shape index: {}]  }
   0x1 LB: > { %s468_s13 = sadd.s32 4294967295, %s495_s12   ;;  %p472_p0 = scmp.ge.s32.totalorder %s495_s12, 1  ;;  %s495_s12 = sphi %s517_s12, %s13_s12  }
   0x2   : > { %p138_p1 = scmp.lt.s32.totalorder %s495_s12, 3 }
   0x4   : > { %p139_p2 = pnand %p472_p0, %p138_p1 }
   0x5   : > { %s473_s14 = sshll.u32 (!%p139_p2), %s468_s13, 5  ;;  %v531_v0 = vld [vmem:[%s680_s1] ss:$0 sm:$0xff] (!%p139_p2) }
   0x6   : > { %142 = sbr.rel (%p139_p2) target bundleno = 62 (0x3e), region = 32  ;;  %p163_p3 = scmp.lt.s32.totalorder (!%p139_p2), %s473_s14, 63  ;;  %v541_v1 = vld [vmem:[%s681_s2] ss:$0 sm:$0xff] (!%p139_p2) }
   0xd   : > { %s684_s14 = smov (!%p163_p3, %s473_s14), 63 }
   0xe   : > { %s474_s15 = sshll.u32 %s684_s14, 3 }
   0xf   : > { %s536_s20 = scalar_lea.vmem %s679_s0, %s474_s15  ;;  %s569_s25 = scalar_lea.vmem %s682_s3, %s474_s15 }
  0x10   : > { %v174_v2 = vld [vmem:[%s536_s20] sm:$0xff]  ;;  %v175_v3 = vld [vmem:[%s536_s20 + $0x8] sm:$0xff]  ;;  %v176_v4 = vld [vmem:[%s536_s20 + $0x10] sm:$0xff] }
  0x11   : > { %v213_v5 = vmul.f32 %v531_v0, %v174_v2  ;;  %v214_v6 = vmul.f32 %v531_v0, %v175_v3  ;;  %v215_v7 = vmul.f32 %v531_v0, %v176_v4  ;;  %v177_v8 = vld [vmem:[%s536_s20 + $0x18] sm:$0xff]  ;;  %v178_v9 = vld [vmem:[%s536_s20 + $0x20] sm:$0xff]  ;;  %v179_v10 = vld [vmem:[%s536_s20 + $0x28] sm:$0xff] }
  0x12   : > { %v216_v11 = vmul.f32 %v531_v0, %v177_v8  ;;  %v217_v12 = vmul.f32 %v531_v0, %v178_v9  ;;  %v218_v13 = vmul.f32 %v531_v0, %v179_v10  ;;  %v180_v14 = vld [vmem:[%s536_s20 + $0x30] sm:$0xff]  ;;  %v181_v15 = vld [vmem:[%s536_s20 + $0x38] sm:$0xff]  ;;  %v182_v24 = vld [vmem:[%s536_s20 + $0x40] sm:$0xff] }
  0x13   : > { %v252_v16 = vadd.f32 %v541_v1, %v213_v5  ;;  %v253_v17 = vadd.f32 %v541_v1, %v214_v6  ;;  %v254_v18 = vadd.f32 %v541_v1, %v215_v7  ;;  %v219_v19 = vmul.f32 %v531_v0, %v180_v14  ;;  %v183_v32 = vld [vmem:[%s536_s20 + $0x48] sm:$0xff]  ;;  %v184_v33 = vld [vmem:[%s536_s20 + $0x50] sm:$0xff]  ;;  %v185_v34 = vld [vmem:[%s536_s20 + $0x58] sm:$0xff] }
  0x14   : > { %v255_v20 = vadd.f32 %v541_v1, %v216_v11  ;;  %v256_v21 = vadd.f32 %v541_v1, %v217_v12  ;;  %v257_v22 = vadd.f32 %v541_v1, %v218_v13  ;;  %v220_v23 = vmul.f32 %v531_v0, %v181_v15  ;;  %v186_v46 = vld [vmem:[%s536_s20 + $0x60] sm:$0xff]  ;;  %v187_v47 = vld [vmem:[%s536_s20 + $0x68] sm:$0xff]  ;;  %v188_v58 = vld [vmem:[%s536_s20 + $0x70] sm:$0xff] }
  0x15   : > { %vm284_vm0 = vcmp.ge.f32.partialorder %v252_v16, 0.0  ;;  %v316_v25 = vmul.f32 0.01, %v252_v16  ;;  %vm285_vm1 = vcmp.ge.f32.partialorder %v253_v17, 0.0  ;;  %v317_v26 = vmul.f32 0.01, %v253_v17 }
  0x16   : > { %vm286_vm2 = vcmp.ge.f32.partialorder %v254_v18, 0.0  ;;  %v318_v27 = vmul.f32 0.01, %v254_v18  ;;  %vm287_vm3 = vcmp.ge.f32.partialorder %v255_v20, 0.0  ;;  %v319_v28 = vmul.f32 0.01, %v255_v20 }
  0x17   : > { %v348_v29 = vsel %vm284_vm0, %v252_v16, %v316_v25  ;;  %v349_v30 = vsel %vm285_vm1, %v253_v17, %v317_v26  ;;  %vm288_vm4 = vcmp.ge.f32.partialorder %v256_v21, 0.0  ;;  %v320_v31 = vmul.f32 0.01, %v256_v21  ;;  %v189_v59 = vld [vmem:[%s536_s20 + $0x78] sm:$0xff]  ;;  %v190_v6 = vld [vmem:[%s536_s20 + $0x80] sm:$0xff]  ;;  %v191_v7 = vld [vmem:[%s536_s20 + $0x88] sm:$0xff] }
  0x18   : > { %380 = vst [vmem:[%s569_s25] sm:$0xff] %v348_v29  ;;  %381 = vst [vmem:[%s569_s25 + $0x8] sm:$0xff] %v349_v30  ;;  %v350_v35 = vsel %vm286_vm2, %v254_v18, %v318_v27  ;;  %v351_v36 = vsel %vm287_vm3, %v255_v20, %v319_v28  ;;  %vm289_vm5 = vcmp.ge.f32.partialorder %v257_v22, 0.0  ;;  %v321_v37 = vmul.f32 0.01, %v257_v22  ;;  %v192_v12 = vld [vmem:[%s536_s20 + $0x90] sm:$0xff]  ;;  %v193_v13 = vld [vmem:[%s536_s20 + $0x98] sm:$0xff] }
  0x19   : > { %382 = vst [vmem:[%s569_s25 + $0x10] sm:$0xff] %v350_v35  ;;  %383 = vst [vmem:[%s569_s25 + $0x18] sm:$0xff] %v351_v36  ;;  %v352_v38 = vsel %vm288_vm4, %v256_v21, %v320_v31  ;;  %v258_v39 = vadd.f32 %v541_v1, %v219_v19  ;;  %v259_v40 = vadd.f32 %v541_v1, %v220_v23  ;;  %v195_v25 = vld [vmem:[%s536_s20 + $0xa8] sm:$0xff]  ;;  %v196_v36 = vld [vmem:[%s536_s20 + $0xb0] sm:$0xff] }
  0x1a   : > { %v221_v41 = vmul.f32 %v531_v0, %v182_v24  ;;  %384 = vst [vmem:[%s569_s25 + $0x20] sm:$0xff] %v352_v38  ;;  %v353_v42 = vsel %vm289_vm5, %v257_v22, %v321_v37  ;;  %v222_v43 = vmul.f32 %v531_v0, %v183_v32  ;;  %v223_v44 = vmul.f32 %v531_v0, %v184_v33  ;;  %v194_v24 = vld [vmem:[%s536_s20 + $0xa0] sm:$0xff]  ;;  %v197_v37 = vld [vmem:[%s536_s20 + $0xb8] sm:$0xff] }
  0x1b   : > { %v224_v45 = vmul.f32 %v531_v0, %v185_v34  ;;  %385 = vst [vmem:[%s569_s25 + $0x28] sm:$0xff] %v353_v42  ;;  %vm290_vm6 = vcmp.ge.f32.partialorder %v258_v39, 0.0  ;;  %v322_v48 = vmul.f32 0.01, %v258_v39  ;;  %vm291_vm7 = vcmp.ge.f32.partialorder %v259_v40, 0.0 }
  0x1c   : > { %v323_v49 = vmul.f32 0.01, %v259_v40  ;;  %v260_v50 = vadd.f32 %v541_v1, %v221_v41  ;;  %v261_v51 = vadd.f32 %v541_v1, %v222_v43  ;;  %v262_v52 = vadd.f32 %v541_v1, %v223_v44 }
  0x1d   : > { %v263_v53 = vadd.f32 %v541_v1, %v224_v45  ;;  %v354_v54 = vsel %vm290_vm6, %v258_v39, %v322_v48  ;;  %v225_v56 = vmul.f32 %v531_v0, %v186_v46  ;;  %v226_v57 = vmul.f32 %v531_v0, %v187_v47  ;;  %v198_v46 = vld [vmem:[%s536_s20 + $0xc0] sm:$0xff]  ;;  %v199_v47 = vld [vmem:[%s536_s20 + $0xc8] sm:$0xff] }
  0x1e   : > { %v355_v55 = vsel %vm291_vm7, %v259_v40, %v323_v49  ;;  %386 = vst [vmem:[%s569_s25 + $0x30] sm:$0xff] %v354_v54  ;;  %vm292_vm8 = vcmp.ge.f32.partialorder %v260_v50, 0.0  ;;  %v324_v60 = vmul.f32 0.01, %v260_v50  ;;  %vm293_vm9 = vcmp.ge.f32.partialorder %v261_v51, 0.0 }
  0x1f   : > { %387 = vst [vmem:[%s569_s25 + $0x38] sm:$0xff] %v355_v55  ;;  %v325_v61 = vmul.f32 0.01, %v261_v51  ;;  %vm294_vm10 = vcmp.ge.f32.partialorder %v262_v52, 0.0  ;;  %v326_v62 = vmul.f32 0.01, %v262_v52  ;;  %v264_v4 = vadd.f32 %v541_v1, %v225_v56 }
  0x20   : > { %vm295_vm11 = vcmp.ge.f32.partialorder %v263_v53, 0.0  ;;  %v327_v63 = vmul.f32 0.01, %v263_v53  ;;  %v356_v2 = vsel %vm292_vm8, %v260_v50, %v324_v60  ;;  %v265_v5 = vadd.f32 %v541_v1, %v226_v57 }
  0x21   : > { %v357_v3 = vsel %vm293_vm9, %v261_v51, %v325_v61  ;;  %388 = vst [vmem:[%s569_s25 + $0x40] sm:$0xff] %v356_v2  ;;  %v358_v8 = vsel %vm294_vm10, %v262_v52, %v326_v62  ;;  %v227_v10 = vmul.f32 %v531_v0, %v188_v58  ;;  %v228_v11 = vmul.f32 %v531_v0, %v189_v59  ;;  %v200_v52 = vld [vmem:[%s536_s20 + $0xd0] sm:$0xff]  ;;  %v202_v2 = vld [vmem:[%s536_s20 + $0xe0] sm:$0xff] }
  0x22   : > { %389 = vst [vmem:[%s569_s25 + $0x48] sm:$0xff] %v357_v3  ;;  %v359_v9 = vsel %vm295_vm11, %v263_v53, %v327_v63  ;;  %390 = vst [vmem:[%s569_s25 + $0x50] sm:$0xff] %v358_v8  ;;  %vm296_vm12 = vcmp.ge.f32.partialorder %v264_v4, 0.0  ;;  %v328_v14 = vmul.f32 0.01, %v264_v4  ;;  %vm297_vm13 = vcmp.ge.f32.partialorder %v265_v5, 0.0 }
  0x23   : > { %391 = vst [vmem:[%s569_s25 + $0x58] sm:$0xff] %v359_v9  ;;  %v329_v15 = vmul.f32 0.01, %v265_v5  ;;  %v266_v16 = vadd.f32 %v541_v1, %v227_v10  ;;  %v267_v17 = vadd.f32 %v541_v1, %v228_v11  ;;  %v229_v18 = vmul.f32 %v531_v0, %v190_v6  ;;  %v201_v53 = vld [vmem:[%s536_s20 + $0xd8] sm:$0xff]  ;;  %v203_v3 = vld [vmem:[%s536_s20 + $0xe8] sm:$0xff] }
  0x24   : > { %v230_v19 = vmul.f32 %v531_v0, %v191_v7  ;;  %v360_v20 = vsel %vm296_vm12, %v264_v4, %v328_v14  ;;  %v231_v22 = vmul.f32 %v531_v0, %v192_v12  ;;  %v232_v23 = vmul.f32 %v531_v0, %v193_v13  ;;  %v204_v14 = vld [vmem:[%s536_s20 + $0xf0] sm:$0xff] }
  0x25   : > { %v361_v21 = vsel %vm297_vm13, %v265_v5, %v329_v15  ;;  %392 = vst [vmem:[%s569_s25 + $0x60] sm:$0xff] %v360_v20  ;;  %vm298_vm14 = vcmp.ge.f32.partialorder %v266_v16, 0.0  ;;  %v330_v26 = vmul.f32 0.01, %v266_v16  ;;  %vm299_vm15 = vcmp.ge.f32.partialorder %v267_v17, 0.0  ;;  %v205_v15 = vld [vmem:[%s536_s20 + $0xf8] sm:$0xff] }
  0x26   : > { %393 = vst [vmem:[%s569_s25 + $0x68] sm:$0xff] %v361_v21  ;;  %v331_v27 = vmul.f32 0.01, %v267_v17  ;;  %v268_v28 = vadd.f32 %v541_v1, %v229_v18  ;;  %v269_v29 = vadd.f32 %v541_v1, %v230_v19  ;;  %v270_v30 = vadd.f32 %v541_v1, %v231_v22 }
  0x27   : > { %v271_v31 = vadd.f32 %v541_v1, %v232_v23  ;;  %v362_v32 = vsel %vm298_vm14, %v266_v16, %v330_v26  ;;  %v233_v34 = vmul.f32 %v531_v0, %v194_v24  ;;  %v234_v35 = vmul.f32 %v531_v0, %v195_v25 }
  0x28   : > { %v363_v33 = vsel %vm299_vm15, %v267_v17, %v331_v27  ;;  %394 = vst [vmem:[%s569_s25 + $0x70] sm:$0xff] %v362_v32  ;;  %vm300_vm0 = vcmp.ge.f32.partialorder %v268_v28, 0.0  ;;  %v332_v38 = vmul.f32 0.01, %v268_v28  ;;  %vm301_vm1 = vcmp.ge.f32.partialorder %v269_v29, 0.0 }
  0x29   : > { %395 = vst [vmem:[%s569_s25 + $0x78] sm:$0xff] %v363_v33  ;;  %v333_v39 = vmul.f32 0.01, %v269_v29  ;;  %vm302_vm2 = vcmp.ge.f32.partialorder %v270_v30, 0.0  ;;  %v334_v40 = vmul.f32 0.01, %v270_v30  ;;  %v272_v44 = vadd.f32 %v541_v1, %v233_v34 }
  0x2a   : > { %vm303_vm3 = vcmp.ge.f32.partialorder %v271_v31, 0.0  ;;  %v335_v41 = vmul.f32 0.01, %v271_v31  ;;  %v364_v42 = vsel %vm300_vm0, %v268_v28, %v332_v38  ;;  %v273_v45 = vadd.f32 %v541_v1, %v234_v35 }
  0x2b   : > { %v365_v43 = vsel %vm301_vm1, %v269_v29, %v333_v39  ;;  %396 = vst [vmem:[%s569_s25 + $0x80] sm:$0xff] %v364_v42  ;;  %v366_v48 = vsel %vm302_vm2, %v270_v30, %v334_v40  ;;  %v235_v50 = vmul.f32 %v531_v0, %v196_v36  ;;  %v236_v51 = vmul.f32 %v531_v0, %v197_v37 }
  0x2c   : > { %397 = vst [vmem:[%s569_s25 + $0x88] sm:$0xff] %v365_v43  ;;  %v367_v49 = vsel %vm303_vm3, %v271_v31, %v335_v41  ;;  %398 = vst [vmem:[%s569_s25 + $0x90] sm:$0xff] %v366_v48  ;;  %vm304_vm4 = vcmp.ge.f32.partialorder %v272_v44, 0.0  ;;  %v336_v54 = vmul.f32 0.01, %v272_v44  ;;  %vm305_vm5 = vcmp.ge.f32.partialorder %v273_v45, 0.0 }
  0x2d   : > { %399 = vst [vmem:[%s569_s25 + $0x98] sm:$0xff] %v367_v49  ;;  %v337_v55 = vmul.f32 0.01, %v273_v45  ;;  %v274_v56 = vadd.f32 %v541_v1, %v235_v50  ;;  %v275_v57 = vadd.f32 %v541_v1, %v236_v51  ;;  %v237_v58 = vmul.f32 %v531_v0, %v198_v46 }
  0x2e   : > { %v238_v59 = vmul.f32 %v531_v0, %v199_v47  ;;  %v368_v60 = vsel %vm304_vm4, %v272_v44, %v336_v54  ;;  %v239_v62 = vmul.f32 %v531_v0, %v200_v52  ;;  %v240_v63 = vmul.f32 %v531_v0, %v201_v53 }
  0x2f   : > { %v369_v61 = vsel %vm305_vm5, %v273_v45, %v337_v55  ;;  %400 = vst [vmem:[%s569_s25 + $0xa0] sm:$0xff] %v368_v60  ;;  %vm306_vm6 = vcmp.ge.f32.partialorder %v274_v56, 0.0  ;;  %v338_v4 = vmul.f32 0.01, %v274_v56  ;;  %vm307_vm7 = vcmp.ge.f32.partialorder %v275_v57, 0.0 }
  0x30   : > { %401 = vst [vmem:[%s569_s25 + $0xa8] sm:$0xff] %v369_v61  ;;  %v339_v5 = vmul.f32 0.01, %v275_v57  ;;  %v276_v6 = vadd.f32 %v541_v1, %v237_v58  ;;  %v277_v7 = vadd.f32 %v541_v1, %v238_v59  ;;  %v278_v8 = vadd.f32 %v541_v1, %v239_v62 }
  0x31   : > { %v279_v9 = vadd.f32 %v541_v1, %v240_v63  ;;  %v370_v10 = vsel %vm306_vm6, %v274_v56, %v338_v4  ;;  %v241_v12 = vmul.f32 %v531_v0, %v202_v2  ;;  %v242_v13 = vmul.f32 %v531_v0, %v203_v3 }
  0x32   : > { %v371_v11 = vsel %vm307_vm7, %v275_v57, %v339_v5  ;;  %402 = vst [vmem:[%s569_s25 + $0xb0] sm:$0xff] %v370_v10  ;;  %vm308_vm8 = vcmp.ge.f32.partialorder %v276_v6, 0.0  ;;  %v340_v16 = vmul.f32 0.01, %v276_v6  ;;  %vm309_vm9 = vcmp.ge.f32.partialorder %v277_v7, 0.0 }
  0x33   : > { %403 = vst [vmem:[%s569_s25 + $0xb8] sm:$0xff] %v371_v11  ;;  %v341_v17 = vmul.f32 0.01, %v277_v7  ;;  %vm310_vm10 = vcmp.ge.f32.partialorder %v278_v8, 0.0  ;;  %v342_v18 = vmul.f32 0.01, %v278_v8  ;;  %v280_v22 = vadd.f32 %v541_v1, %v241_v12 }
  0x34   : > { %vm311_vm11 = vcmp.ge.f32.partialorder %v279_v9, 0.0  ;;  %v343_v19 = vmul.f32 0.01, %v279_v9  ;;  %v372_v20 = vsel %vm308_vm8, %v276_v6, %v340_v16  ;;  %v281_v23 = vadd.f32 %v541_v1, %v242_v13 }
  0x35   : > { %v373_v21 = vsel %vm309_vm9, %v277_v7, %v341_v17  ;;  %404 = vst [vmem:[%s569_s25 + $0xc0] sm:$0xff] %v372_v20  ;;  %v374_v24 = vsel %vm310_vm10, %v278_v8, %v342_v18  ;;  %v243_v26 = vmul.f32 %v531_v0, %v204_v14  ;;  %v244_v27 = vmul.f32 %v531_v0, %v205_v15 }
  0x36   : > { %405 = vst [vmem:[%s569_s25 + $0xc8] sm:$0xff] %v373_v21  ;;  %v375_v25 = vsel %vm311_vm11, %v279_v9, %v343_v19  ;;  %406 = vst [vmem:[%s569_s25 + $0xd0] sm:$0xff] %v374_v24  ;;  %vm312_vm12 = vcmp.ge.f32.partialorder %v280_v22, 0.0  ;;  %v344_v28 = vmul.f32 0.01, %v280_v22  ;;  %vm313_vm13 = vcmp.ge.f32.partialorder %v281_v23, 0.0 }
  0x37   : > { %407 = vst [vmem:[%s569_s25 + $0xd8] sm:$0xff] %v375_v25  ;;  %v345_v29 = vmul.f32 0.01, %v281_v23  ;;  %v282_v30 = vadd.f32 %v541_v1, %v243_v26  ;;  %v283_v31 = vadd.f32 %v541_v1, %v244_v27 }
  0x38   : > { %v376_v32 = vsel %vm312_vm12, %v280_v22, %v344_v28 }
  0x39   : > { %v377_v33 = vsel %vm313_vm13, %v281_v23, %v345_v29  ;;  %408 = vst [vmem:[%s569_s25 + $0xe0] sm:$0xff] %v376_v32  ;;  %vm314_vm14 = vcmp.ge.f32.partialorder %v282_v30, 0.0  ;;  %v346_v34 = vmul.f32 0.01, %v282_v30  ;;  %vm315_vm15 = vcmp.ge.f32.partialorder %v283_v31, 0.0 }
  0x3a   : > { %409 = vst [vmem:[%s569_s25 + $0xe8] sm:$0xff] %v377_v33  ;;  %v347_v0 = vmul.f32 0.01, %v283_v31 }
  0x3b   : > { %v378_v35 = vsel %vm314_vm14, %v282_v30, %v346_v34 }
  0x3c   : > { %v379_v36 = vsel %vm315_vm15, %v283_v31, %v347_v0  ;;  %410 = vst [vmem:[%s569_s25 + $0xf0] sm:$0xff] %v378_v35 }
  0x3d   : > { %411 = vst [vmem:[%s569_s25 + $0xf8] sm:$0xff] %v379_v36 }
  0x3e PF: > { %s13_s12 = sadd.s32 1, %s495_s12  }
  0x3f   : > { %p10_p4 = scmp.ge.s32.totalorder %s13_s12, 4  }
  0x41   :  { %12 = sbr.rel (!%p10_p4) target bundleno = 1 (0x1), region = 62 }

// kernel: con_bn_leak_5set_forward.12
= control target key start
LH: loop header
LB: loop body
LE: loop exit
PB: predicated region body
PF: predicated region fallthrough
CT: control target
= control target key end

     0   :  { %s1626_s21 = smov 0   ;;  %s1628_s22 = smov 0   ;;  %s2228_s0 = inlined_call_operand.vmem [shape: f32[2,18,18,128], index: 0, kind: input, shape index: {}, may-alias: {0,1,2}]   ;;  %s2229_s1 = inlined_call_operand.vmem [shape: f32[2,18,18,128], index: 1, kind: input, shape index: {}, may-alias: {0,1,2}]   ;;  %s2230_s2 = inlined_call_operand.vmem [shape: f32[2,18,18,128], index: 2, kind: input, shape index: {}, may-alias: {0,1,2}]   ;;  %s2231_s3 = inlined_call_operand.vmem [shape: f32[1152,128], index: 3, kind: input, shape index: {}]   ;;  %s2232_s4 = inlined_call_operand.vmem [shape: f32[2,16,16,128], index: 4, kind: output, shape index: {0}]   ;;  %s2233_s5 = inlined_call_operand.vmem [shape: f32[1,128], index: 5, kind: output, shape index: {1}]   ;;  %s2234_s6 = inlined_call_operand.vmem [shape: f32[1,128], index: 6, kind: output, shape index: {2}]  }
   0x1   :  { %2235 = sst [smem:[#allocation3_spill]] %s2228_s0  ;;  %s1630_s23 = smov 0  }
   0x2   :  { %s1632_s24 = smov 0   ;;  %s1634_s25 = smov 0  }
   0x3 LB: > { %s26_s26 = sadd.s32 1, %s1580_s23  ;;  %s29_s27 = sadd.s32 1, %s1584_s24  ;;  %s1588_s25 = sphi %s1634_s25, %s17_s25   ;;  %s1584_s24 = sphi %s1632_s24, %s2242_s24   ;;  %s1580_s23 = sphi %s1630_s23, %s2241_s23   ;;  %s1576_s22 = sphi %s1628_s22, %s2240_s22   ;;  %s1572_s21 = sphi %s1626_s21, %s2239_s21  }
   0x4   : > { %p27_p0 = scmp.ge.s32.totalorder %s26_s26, 16  ;;  %p1131_p1 = scmp.ge.s32.totalorder %s1588_s25, 1 }
   0x5   : > { %p267_p2 = scmp.lt.s32.totalorder %s1588_s25, 33 }
   0x6   : > { %s2244_s26 = smov (%p27_p0, %s26_s26), 0  ;;  %s2246_s27 = smov (!%p27_p0, %s29_s27), %s1584_s24 }
   0x7   : > { %p268_p3 = pnand %p1131_p1, %p267_p2  ;;  %p31_p4 = scmp.ge.s32.totalorder %s2246_s27, 2 }
   0x8   : > { %p325_p5 = scmp.lt.s32.totalorder (!%p268_p3), %s1576_s22, 1  ;;  %p327_p6 = scmp.lt.s32.totalorder (!%p268_p3), %s1572_s21, 17 }
   0x9   : > { %s2248_s27 = smov (%p31_p4, %s2246_s27), 0  ;;  %271 = sbr.rel (%p268_p3) target bundleno = 370 (0x172), region = 36 }
   0xa   : > { %2236 = sst [smem:[#allocation2_spill]] %s2248_s27  ;;  %s334_s28 = sadd.s32 (!%p268_p3), 1, %s1572_s21 }
   0xb   : > { %s345_s29 = sadd.s32 (!%p268_p3), 2, %s1572_s21  ;;  %p337_p7 = scmp.lt.s32.totalorder (!%p268_p3), %s334_s28, 17 }
   0xc   : > { %p348_p8 = scmp.lt.s32.totalorder (!%p268_p3), %s345_s29, 17  ;;  %s2237_s0 = sld [smem:[#allocation3_spill]] (!%p268_p3) }
   0xd   : > { %p358_p9 = scmp.lt.s32.totalorder (!%p268_p3), %s1572_s21, 15  ;;  %p365_p10 = scmp.eq.s32.totalorder (!%p268_p3), %s1576_s22, 0 }
   0xe   : > { %p366_p11 = scmp.eq.s32.totalorder (!%p268_p3), %s1572_s21, 0 }
  0x10   : > { %s326_s30 = scalar_select %p325_p5, %s1576_s22, 1 }
  0x11   : > { %s328_s7 = scalar_select %p327_p6, %s1572_s21, 17 }
  0x12   : > { %s1506_s8 = smul.u32 54, %s326_s30  ;;  %s2250_s28 = smov (!%p337_p7, %s334_s28), 17 }
  0x13   : > { %s1505_s9 = smul.u32 3, %s328_s7  ;;  %s1136_s7 = sshll.u32 %s326_s30, 5 }
  0x14   : > { %s1507_s12 = smul.u32 3, %s2250_s28  ;;  %s2252_s29 = smov (!%p348_p8, %s345_s29), 17 }
  0x15   : > { %s331_s10 = sadd.s32 %s1506_s8, %s1505_s9  ;;  %s2254_s21 = smov (!%p358_p9, %s1572_s21), 15 }
  0x16   : > { %s1132_s11 = sshll.u32 %s331_s10, 3  ;;  %s341_s16 = sadd.s32 %s1507_s12, %s1506_s8 }
  0x17   : > { %s1669_s15 = scalar_lea.vmem %s2237_s0, %s1132_s11  ;;  %s1133_s17 = sshll.u32 %s341_s16, 3 }
  0x18   : > { %s1677_s20 = scalar_lea.vmem %s2229_s1, %s1133_s17  ;;  %s1508_s9 = smul.u32 3, %s2252_s29 }
  0x19   : > { %p367_p12 = pnand %p366_p11, %p365_p10  ;;  %s1135_s28 = sshll.u32 %s2254_s21, 1 }
  0x1a   : > { %s352_s10 = sadd.s32 %s1508_s9, %s1506_s8  ;;  %s362_s13 = sadd.s32 %s1136_s7, %s1135_s28  ;;  %v1590_v0 = vmov (!%p367_p12), 0.0  }
  0x1b   : > { %s1134_s11 = sshll.u32 %s352_s10, 3  ;;  %s1137_s14 = sshll.u32 %s362_s13, 3  ;;  %371 = vst [vmem:[%s2233_s5] sm:$0x1] (!%p367_p12), %v1590_v0  ;;  %372 = vst [vmem:[%s2234_s6] sm:$0x1] (!%p367_p12), %v1590_v0 }
  0x1c   : > { %s1683_s22 = scalar_lea.vmem %s2230_s2, %s1134_s11  ;;  %s1688_s17 = scalar_lea.vmem %s2232_s4, %s1137_s14 }
  0x1d   : > { %370 = sbr.rel (%p367_p12) target bundleno = 36 (0x24), region = 40 }
  0x24 PF: > { %v451_v1 = vld [vmem:[%s2231_s3 + $0x80] sm:$0xff]  ;;  %v452_v2 = vld [vmem:[%s2231_s3 + $0x88] sm:$0xff]  ;;  %v453_v12 = vld [vmem:[%s2231_s3 + $0x90] sm:$0xff]  ;;  %vm385_vm0 = vcmask 1046528   ;;  %vm393_vm1 = vcmask 1045504  }
  0x25   : > { %v483_v3 = vld [vmem:[%s2231_s3 + $0x180] sm:$0xff]  ;;  %v1345_v4 = vpack.c.bf16 %v452_v2, %v451_v1  ;;  %v484_v5 = vld [vmem:[%s2231_s3 + $0x188] sm:$0xff]  ;;  %v454_v14 = vld [vmem:[%s2231_s3 + $0x98] sm:$0xff] }
  0x26   : > { %v435_v6 = vld [vmem:[%s2231_s3] sm:$0xff]  ;;  %v436_v7 = vld [vmem:[%s2231_s3 + $0x8] sm:$0xff]  ;;  %v1377_v8 = vpack.c.bf16 %v484_v5, %v483_v3  ;;  %v485_v15 = vld [vmem:[%s2231_s3 + $0x190] sm:$0xff]  ;;  %v1349_v17 = vpack.c.bf16 %v454_v14, %v453_v12 }
  0x27   : > { %v1347_v9 = vpack.c.bf16 %v436_v7, %v435_v6  ;;  %v467_v10 = vld [vmem:[%s2231_s3 + $0x100] sm:$0xff]  ;;  %v468_v11 = vld [vmem:[%s2231_s3 + $0x108] sm:$0xff]  ;;  %1346 = vmatprep.subr.bf16.mxu0 %v1345_v4  ;;  %v486_v16 = vld [vmem:[%s2231_s3 + $0x198] sm:$0xff] }
  0x28   : > { %v1379_v13 = vpack.c.bf16 %v468_v11, %v467_v10  ;;  %1378 = vmatprep.subr.bf16.mxu1 %v1377_v8  ;;  %v1381_v18 = vpack.c.bf16 %v486_v16, %v485_v15  ;;  %v437_v19 = vld [vmem:[%s2231_s3 + $0x10] sm:$0xff]  ;;  %v438_v20 = vld [vmem:[%s2231_s3 + $0x18] sm:$0xff]  ;;  %v455_v24 = vld [vmem:[%s2231_s3 + $0xa0] sm:$0xff] }
  0x29   : > { %1348 = vmatpush3.bf16.msra.mxu0 %v1347_v9  ;;  %v469_v21 = vld [vmem:[%s2231_s3 + $0x110] sm:$0xff]  ;;  %v1351_v22 = vpack.c.bf16 %v438_v20, %v437_v19  ;;  %v470_v23 = vld [vmem:[%s2231_s3 + $0x118] sm:$0xff]  ;;  %v456_v25 = vld [vmem:[%s2231_s3 + $0xa8] sm:$0xff] }
  0x2a   : > { %1380 = vmatpush3.bf16.msra.mxu1 %v1379_v13  ;;  %1350 = vmatprep.subr.bf16.mxu0 %v1349_v17  ;;  %v1383_v26 = vpack.c.bf16 %v470_v23, %v469_v21  ;;  %v1353_v27 = vpack.c.bf16 %v456_v25, %v455_v24  ;;  %v487_v28 = vld [vmem:[%s2231_s3 + $0x1a0] sm:$0xff]  ;;  %v488_v29 = vld [vmem:[%s2231_s3 + $0x1a8] sm:$0xff]  ;;  %v457_v36 = vld [vmem:[%s2231_s3 + $0xb0] sm:$0xff] }
  0x2b   : > { %1382 = vmatprep.subr.bf16.mxu1 %v1381_v18  ;;  %v439_v30 = vld [vmem:[%s2231_s3 + $0x20] sm:$0xff]  ;;  %v1385_v31 = vpack.c.bf16 %v488_v29, %v487_v28  ;;  %v440_v32 = vld [vmem:[%s2231_s3 + $0x28] sm:$0xff]  ;;  %v458_v37 = vld [vmem:[%s2231_s3 + $0xb8] sm:$0xff] }
  0x2c   : > { %v471_v33 = vld [vmem:[%s2231_s3 + $0x120] sm:$0xff]  ;;  %v472_v34 = vld [vmem:[%s2231_s3 + $0x128] sm:$0xff]  ;;  %v1355_v35 = vpack.c.bf16 %v440_v32, %v439_v30  ;;  %v489_v38 = vld [vmem:[%s2231_s3 + $0x1b0] sm:$0xff]  ;;  %v1357_v40 = vpack.c.bf16 %v458_v37, %v457_v36 }
  0x2d   : > { %1352 = vmatpush3.bf16.msra.mxu0 %v1351_v22  ;;  %v1387_v39 = vpack.c.bf16 %v472_v34, %v471_v33  ;;  %v490_v41 = vld [vmem:[%s2231_s3 + $0x1b8] sm:$0xff]  ;;  %v441_v42 = vld [vmem:[%s2231_s3 + $0x30] sm:$0xff]  ;;  %v459_v47 = vld [vmem:[%s2231_s3 + $0xc0] sm:$0xff] }
  0x2e   : > { %1384 = vmatpush3.bf16.msra.mxu1 %v1383_v26  ;;  %1354 = vmatprep.subr.bf16.mxu0 %v1353_v27  ;;  %v442_v43 = vld [vmem:[%s2231_s3 + $0x38] sm:$0xff]  ;;  %v1389_v44 = vpack.c.bf16 %v490_v41, %v489_v38  ;;  %v473_v45 = vld [vmem:[%s2231_s3 + $0x130] sm:$0xff]  ;;  %v460_v48 = vld [vmem:[%s2231_s3 + $0xc8] sm:$0xff] }
  0x2f   : > { %1386 = vmatprep.subr.bf16.mxu1 %v1385_v31  ;;  %v474_v46 = vld [vmem:[%s2231_s3 + $0x138] sm:$0xff]  ;;  %v491_v49 = vld [vmem:[%s2231_s3 + $0x1c0] sm:$0xff]  ;;  %v492_v50 = vld [vmem:[%s2231_s3 + $0x1c8] sm:$0xff]  ;;  %v1359_v51 = vpack.c.bf16 %v442_v43, %v441_v42  ;;  %v1361_v53 = vpack.c.bf16 %v460_v48, %v459_v47 }
  0x30   : > { %v1391_v52 = vpack.c.bf16 %v474_v46, %v473_v45  ;;  %v443_v54 = vld [vmem:[%s2231_s3 + $0x40] sm:$0xff]  ;;  %v444_v55 = vld [vmem:[%s2231_s3 + $0x48] sm:$0xff]  ;;  %v1393_v57 = vpack.c.bf16 %v492_v50, %v491_v49  ;;  %v461_v59 = vld [vmem:[%s2231_s3 + $0xd0] sm:$0xff] }
  0x31   : > { %1356 = vmatpush3.bf16.msra.mxu0 %v1355_v35  ;;  %v475_v56 = vld [vmem:[%s2231_s3 + $0x140] sm:$0xff]  ;;  %v476_v58 = vld [vmem:[%s2231_s3 + $0x148] sm:$0xff]  ;;  %v462_v60 = vld [vmem:[%s2231_s3 + $0xd8] sm:$0xff]  ;;  %v1363_v63 = vpack.c.bf16 %v444_v55, %v443_v54 }
  0x32   : > { %1388 = vmatpush3.bf16.msra.mxu1 %v1387_v39  ;;  %1358 = vmatprep.subr.bf16.mxu0 %v1357_v40  ;;  %v493_v61 = vld [vmem:[%s2231_s3 + $0x1d0] sm:$0xff]  ;;  %v494_v62 = vld [vmem:[%s2231_s3 + $0x1d8] sm:$0xff]  ;;  %v1395_v0 = vpack.c.bf16 %v476_v58, %v475_v56  ;;  %v1365_v1 = vpack.c.bf16 %v462_v60, %v461_v59  ;;  %v463_v7 = vld [vmem:[%s2231_s3 + $0xe0] sm:$0xff] }
  0x33   : > { %1390 = vmatprep.subr.bf16.mxu1 %v1389_v44  ;;  %v445_v2 = vld [vmem:[%s2231_s3 + $0x50] sm:$0xff]  ;;  %v446_v3 = vld [vmem:[%s2231_s3 + $0x58] sm:$0xff]  ;;  %v1397_v5 = vpack.c.bf16 %v494_v62, %v493_v61  ;;  %v464_v8 = vld [vmem:[%s2231_s3 + $0xe8] sm:$0xff] }
  0x34   : > { %v477_v4 = vld [vmem:[%s2231_s3 + $0x150] sm:$0xff]  ;;  %v478_v6 = vld [vmem:[%s2231_s3 + $0x158] sm:$0xff]  ;;  %v495_v9 = vld [vmem:[%s2231_s3 + $0x1e0] sm:$0xff]  ;;  %v1367_v11 = vpack.c.bf16 %v446_v3, %v445_v2  ;;  %v1369_v16 = vpack.c.bf16 %v464_v8, %v463_v7 }
  0x35   : > { %1360 = vmatpush3.bf16.msra.mxu0 %v1359_v51  ;;  %v496_v10 = vld [vmem:[%s2231_s3 + $0x1e8] sm:$0xff]  ;;  %v447_v12 = vld [vmem:[%s2231_s3 + $0x60] sm:$0xff]  ;;  %v1399_v15 = vpack.c.bf16 %v478_v6, %v477_v4  ;;  %v465_v21 = vld [vmem:[%s2231_s3 + $0xf0] sm:$0xff] }
  0x36   : > { %1392 = vmatpush3.bf16.msra.mxu1 %v1391_v52  ;;  %1362 = vmatprep.subr.bf16.mxu0 %v1361_v53  ;;  %v448_v13 = vld [vmem:[%s2231_s3 + $0x68] sm:$0xff]  ;;  %v479_v14 = vld [vmem:[%s2231_s3 + $0x160] sm:$0xff]  ;;  %v1401_v20 = vpack.c.bf16 %v496_v10, %v495_v9  ;;  %v466_v22 = vld [vmem:[%s2231_s3 + $0xf8] sm:$0xff] }
  0x37   : > { %1394 = vmatprep.subr.bf16.mxu1 %v1393_v57  ;;  %v480_v17 = vld [vmem:[%s2231_s3 + $0x168] sm:$0xff]  ;;  %v1865_v18 = vld [vmem:[%s1669_s15] sm:$0xff]  ;;  %v497_v26 = vld [vmem:[%s2231_s3 + $0x1f0] sm:$0xff]  ;;  %v1371_v28 = vpack.c.bf16 %v448_v13, %v447_v12  ;;  %v1373_v31 = vpack.c.bf16 %v466_v22, %v465_v21 }
  0x38   : > { %v1868_v19 = vld [vmem:[%s1669_s15 + $0x8] sm:$0xff]  ;;  %v386_v23 = vrot.slane %v1865_v18, 1  ;;  %v1879_v25 = vld [vmem:[%s1677_s20] sm:$0xff]  ;;  %v498_v27 = vld [vmem:[%s2231_s3 + $0x1f8] sm:$0xff]  ;;  %v1403_v30 = vpack.c.bf16 %v480_v17, %v479_v14  ;;  %v394_v43 = vrot.slane %v1865_v18, 2 }
  0x39   : > { %1364 = vmatpush3.bf16.msra.mxu0 %v1363_v63  ;;  %v387_v24 = vrot.slane %v1868_v19, 1  ;;  %718 = vmatprep.mubr.f32.mxu1 %v1879_v25  ;;  %v449_v32 = vld [vmem:[%s2231_s3 + $0x70] sm:$0xff]  ;;  %v450_v33 = vld [vmem:[%s2231_s3 + $0x78] sm:$0xff]  ;;  %v1405_v35 = vpack.c.bf16 %v498_v27, %v497_v26  ;;  %v515_v37 = vld [vmem:[%s2231_s3 + $0x280] sm:$0xff]  ;;  %v395_v44 = vrot.slane %v1868_v19, 2 }
  0x3a   : > { %1396 = vmatpush3.bf16.msra.mxu1 %v1395_v0  ;;  %1366 = vmatprep.subr.bf16.mxu0 %v1365_v1  ;;  %v481_v34 = vld [vmem:[%s2231_s3 + $0x170] sm:$0xff]  ;;  %v482_v36 = vld [vmem:[%s2231_s3 + $0x178] sm:$0xff]  ;;  %v516_v38 = vld [vmem:[%s2231_s3 + $0x288] sm:$0xff]  ;;  %v1375_v41 = vpack.c.bf16 %v450_v33, %v449_v32 }
  0x3b   : > { %1398 = vmatprep.subr.bf16.mxu1 %v1397_v5  ;;  %v388_v29 = vsel %vm385_vm0, %v386_v23, %v387_v24  ;;  %v547_v39 = vld [vmem:[%s2231_s3 + $0x380] sm:$0xff]  ;;  %v548_v40 = vld [vmem:[%s2231_s3 + $0x388] sm:$0xff]  ;;  %v1407_v42 = vpack.c.bf16 %v482_v36, %v481_v34  ;;  %v1409_v45 = vpack.c.bf16 %v516_v38, %v515_v37  ;;  %v517_v51 = vld [vmem:[%s2231_s3 + $0x290] sm:$0xff]  ;;  %v396_v56 = vsel %vm393_vm1, %v394_v43, %v395_v44 }
  0x3c   : > { %643 = vmatprep.mubr.f32.mxu0 %v388_v29  ;;  %v499_v46 = vld [vmem:[%s2231_s3 + $0x200] sm:$0xff]  ;;  %v500_v47 = vld [vmem:[%s2231_s3 + $0x208] sm:$0xff]  ;;  %v1441_v49 = vpack.c.bf16 %v548_v40, %v547_v39  ;;  %v518_v52 = vld [vmem:[%s2231_s3 + $0x298] sm:$0xff] }
  0x3d   : > { %1368 = vmatpush3.bf16.msra.mxu0 %v1367_v11  ;;  %v531_v48 = vld [vmem:[%s2231_s3 + $0x300] sm:$0xff]  ;;  %v532_v50 = vld [vmem:[%s2231_s3 + $0x308] sm:$0xff]  ;;  %v549_v53 = vld [vmem:[%s2231_s3 + $0x390] sm:$0xff]  ;;  %v1411_v55 = vpack.c.bf16 %v500_v47, %v499_v46  ;;  %v1413_v58 = vpack.c.bf16 %v518_v52, %v517_v51 }
  0x3e   : > { %1400 = vmatpush3.bf16.msra.mxu1 %v1399_v15  ;;  %1370 = vmatprep.subr.bf16.mxu0 %v1369_v16  ;;  %v550_v54 = vld [vmem:[%s2231_s3 + $0x398] sm:$0xff]  ;;  %v1443_v57 = vpack.c.bf16 %v532_v50, %v531_v48  ;;  %v501_v59 = vld [vmem:[%s2231_s3 + $0x210] sm:$0xff]  ;;  %v519_v0 = vld [vmem:[%s2231_s3 + $0x2a0] sm:$0xff]  ;;  %v411_v16 = vrot.slane %v1879_v25, 2 }
  0x3f   : > { %1402 = vmatprep.subr.bf16.mxu1 %v1401_v20  ;;  %v502_v60 = vld [vmem:[%s2231_s3 + $0x218] sm:$0xff]  ;;  %v533_v61 = vld [vmem:[%s2231_s3 + $0x310] sm:$0xff]  ;;  %v1445_v62 = vpack.c.bf16 %v550_v54, %v549_v53  ;;  %v520_v1 = vld [vmem:[%s2231_s3 + $0x2a8] sm:$0xff] }
  0x40   : > { %v534_v63 = vld [vmem:[%s2231_s3 + $0x318] sm:$0xff]  ;;  %v551_v2 = vld [vmem:[%s2231_s3 + $0x3a0] sm:$0xff]  ;;  %v552_v3 = vld [vmem:[%s2231_s3 + $0x3a8] sm:$0xff]  ;;  %v1415_v4 = vpack.c.bf16 %v502_v60, %v501_v59  ;;  %v1417_v6 = vpack.c.bf16 %v520_v1, %v519_v0 }
  0x41   : > { %1372 = vmatpush3.bf16.msra.mxu0 %v1371_v28  ;;  %v1447_v5 = vpack.c.bf16 %v534_v63, %v533_v61  ;;  %v503_v7 = vld [vmem:[%s2231_s3 + $0x220] sm:$0xff]  ;;  %v504_v8 = vld [vmem:[%s2231_s3 + $0x228] sm:$0xff]  ;;  %v1449_v10 = vpack.c.bf16 %v552_v3, %v551_v2  ;;  %v521_v12 = vld [vmem:[%s2231_s3 + $0x2b0] sm:$0xff] }
  0x42   : > { %1404 = vmatpush3.bf16.msra.mxu1 %v1403_v30  ;;  %1374 = vmatprep.subr.bf16.mxu0 %v1373_v31  ;;  %v535_v9 = vld [vmem:[%s2231_s3 + $0x320] sm:$0xff]  ;;  %v536_v11 = vld [vmem:[%s2231_s3 + $0x328] sm:$0xff]  ;;  %v522_v13 = vld [vmem:[%s2231_s3 + $0x2b8] sm:$0xff]  ;;  %v1419_v17 = vpack.c.bf16 %v504_v8, %v503_v7 }
  0x43   : > { %1406 = vmatprep.subr.bf16.mxu1 %v1405_v35  ;;  %v553_v14 = vld [vmem:[%s2231_s3 + $0x3b0] sm:$0xff]  ;;  %v554_v15 = vld [vmem:[%s2231_s3 + $0x3b8] sm:$0xff]  ;;  %v1996_v20 = vld [vmem:[%s1677_s20 + $0x8] sm:$0xff]  ;;  %v1451_v21 = vpack.c.bf16 %v536_v11, %v535_v9  ;;  %v1421_v22 = vpack.c.bf16 %v522_v13, %v521_v12 }
  0x44   : > { %v505_v23 = vld [vmem:[%s2231_s3 + $0x230] sm:$0xff]  ;;  %v506_v26 = vld [vmem:[%s2231_s3 + $0x238] sm:$0xff]  ;;  %v412_v29 = vrot.slane %v1996_v20, 2  ;;  %v1453_v30 = vpack.c.bf16 %v554_v15, %v553_v14  ;;  %v523_v32 = vld [vmem:[%s2231_s3 + $0x2c0] sm:$0xff] }
  0x45   : > { %1376 = vmatpush3.bf16.msra.mxu0 %v1375_v41  ;;  %v537_v27 = vld [vmem:[%s2231_s3 + $0x330] sm:$0xff]  ;;  %v538_v31 = vld [vmem:[%s2231_s3 + $0x338] sm:$0xff]  ;;  %v524_v33 = vld [vmem:[%s2231_s3 + $0x2c8] sm:$0xff]  ;;  %v1423_v38 = vpack.c.bf16 %v506_v26, %v505_v23 }
  0x46   : > { %1408 = vmatpush3.bf16.msra.mxu1 %v1407_v42  ;;  %1410 = vmatprep.subr.bf16.mxu0 %v1409_v45  ;;  %v555_v35 = vld [vmem:[%s2231_s3 + $0x3c0] sm:$0xff]  ;;  %v556_v36 = vld [vmem:[%s2231_s3 + $0x3c8] sm:$0xff]  ;;  %v413_v42 = vsel %vm393_vm1, %v411_v16, %v412_v29  ;;  %v1425_v43 = vpack.c.bf16 %v524_v33, %v523_v32  ;;  %v526_v50 = vld [vmem:[%s2231_s3 + $0x2d8] sm:$0xff]  ;;  %v405_v32 = vrot.slane %v1996_v20, 1 }
  0x47   : > { %1442 = vmatprep.subr.bf16.mxu1 %v1441_v49  ;;  %v507_v39 = vld [vmem:[%s2231_s3 + $0x240] sm:$0xff]  ;;  %v508_v40 = vld [vmem:[%s2231_s3 + $0x248] sm:$0xff]  ;;  %v1457_v48 = vpack.c.bf16 %v556_v36, %v555_v35  ;;  %v525_v49 = vld [vmem:[%s2231_s3 + $0x2d0] sm:$0xff] }
  0x48   : > { %644 = vmatmul.mubr.f32.vlgmr.msra.gmra.mrb[0].mxu0 %v1865_v18  ;;  %v375_v18 = vld [vmem:[%s1669_s15 + $0x10] sm:$0x3]  ;;  %v539_v45 = vld [vmem:[%s2231_s3 + $0x340] sm:$0xff]  ;;  %v2046_v47 = vld [vmem:[%s1683_s22 + $0x8] sm:$0xff] }
  0x49   : > { %719 = vmatmul.mubr.f32.vlgmr.msra.gmra.mrb[0].mxu1 %v396_v56  ;;  %1412 = vmatpush3.bf16.msra.mxu0 %v1411_v55  ;;  %v389_v28 = vrot.slane %v375_v18, 1  ;;  %v397_v34 = vrot.slane %v375_v18, 2  ;;  %v2043_v46 = vld [vmem:[%s1683_s22] sm:$0xff]  ;;  %v422_v52 = vrot.slane %v2046_v47, 1  ;;  %v557_v53 = vld [vmem:[%s2231_s3 + $0x3d0] sm:$0xff]  ;;  %v558_v54 = vld [vmem:[%s2231_s3 + $0x3d8] sm:$0xff]  ;;  %v1427_v55 = vpack.c.bf16 %v508_v40, %v507_v39 }
  0x4a   : > { %1444 = vmatpush3.bf16.msra.mxu1 %v1443_v57  ;;  %1414 = vmatprep.subr.bf16.mxu0 %v1413_v58  ;;  %v421_v51 = vrot.slane %v2043_v46, 1  ;;  %v1429_v57 = vpack.c.bf16 %v526_v50, %v525_v49  ;;  %v509_v58 = vld [vmem:[%s2231_s3 + $0x250] sm:$0xff]  ;;  %v510_v59 = vld [vmem:[%s2231_s3 + $0x258] sm:$0xff]  ;;  %v1461_v61 = vpack.c.bf16 %v558_v54, %v557_v53  ;;  %v527_v63 = vld [vmem:[%s2231_s3 + $0x2e0] sm:$0xff] }
  0x4b   : > { %1446 = vmatprep.subr.bf16.mxu1 %v1445_v62  ;;  %723 = vmatprep.mubr.f32.mxu1 %v1996_v20  ;;  %v390_v37 = vsel %vm385_vm0, %v387_v24, %v389_v28  ;;  %v398_v41 = vsel %vm393_vm1, %v395_v44, %v397_v34  ;;  %v1455_v24 = vpack.c.bf16 %v538_v31, %v537_v27  ;;  %v540_v44 = vld [vmem:[%s2231_s3 + $0x348] sm:$0xff]  ;;  %v541_v60 = vld [vmem:[%s2231_s3 + $0x350] sm:$0xff]  ;;  %v542_v62 = vld [vmem:[%s2231_s3 + $0x358] sm:$0xff]  ;;  %v404_v31 = vrot.slane %v1879_v25, 1 }
  0x4c   : > { %648 = vmatprep.mubr.f32.mxu0 %v390_v37  ;;  %v1459_v56 = vpack.c.bf16 %v540_v44, %v539_v45  ;;  %v528_v0 = vld [vmem:[%s2231_s3 + $0x2e8] sm:$0xff]  ;;  %v559_v1 = vld [vmem:[%s2231_s3 + $0x3e0] sm:$0xff]  ;;  %v1431_v3 = vpack.c.bf16 %v510_v59, %v509_v58  ;;  %v529_v11 = vld [vmem:[%s2231_s3 + $0x2f0] sm:$0xff]  ;;  %v429_v44 = vrot.slane %v2046_v47, 2 }
  0x4d   : > { %1416 = vmatpush3.bf16.msra.mxu0 %v1415_v4  ;;  %724 = vmatmul.mubr.f32.gmra.mrb[2].mxu1 %v398_v41  ;;  %v560_v2 = vld [vmem:[%s2231_s3 + $0x3e8] sm:$0xff]  ;;  %v1463_v4 = vpack.c.bf16 %v542_v62, %v541_v60  ;;  %v543_v8 = vld [vmem:[%s2231_s3 + $0x360] sm:$0xff]  ;;  %v530_v12 = vld [vmem:[%s2231_s3 + $0x2f8] sm:$0xff]  ;;  %v406_v40 = vsel %vm385_vm0, %v404_v31, %v405_v32 }
  0x4e   : > { %1448 = vmatpush3.bf16.msra.mxu1 %v1447_v5  ;;  %1418 = vmatprep.subr.bf16.mxu0 %v1417_v6  ;;  %v1433_v5 = vpack.c.bf16 %v528_v0, %v527_v63  ;;  %v511_v6 = vld [vmem:[%s2231_s3 + $0x260] sm:$0xff]  ;;  %v512_v7 = vld [vmem:[%s2231_s3 + $0x268] sm:$0xff]  ;;  %v1465_v9 = vpack.c.bf16 %v560_v2, %v559_v1  ;;  %v561_v13 = vld [vmem:[%s2231_s3 + $0x3f0] sm:$0xff] }
  0x4f   : > { %1450 = vmatprep.subr.bf16.mxu1 %v1449_v10  ;;  %649 = vmatmul.mubr.f32.gmra.mrb[2].mxu0 %v1868_v19  ;;  %v423_v19 = vsel %vm385_vm0, %v421_v51, %v422_v52  ;;  %v544_v10 = vld [vmem:[%s2231_s3 + $0x368] sm:$0xff]  ;;  %v562_v14 = vld [vmem:[%s2231_s3 + $0x3f8] sm:$0xff]  ;;  %v1435_v15 = vpack.c.bf16 %v512_v7, %v511_v6  ;;  %v513_v18 = vld [vmem:[%s2231_s3 + $0x270] sm:$0xff] }
  0x50   : > { %793 = vmatprep.mubr.f32.mxu0 %v413_v42  ;;  %868 = vmatprep.mubr.f32.mxu1 %v423_v19  ;;  %v1467_v16 = vpack.c.bf16 %v544_v10, %v543_v8  ;;  %v1469_v23 = vpack.c.bf16 %v562_v14, %v561_v13  ;;  %v546_v26 = vld [vmem:[%s2231_s3 + $0x378] sm:$0xff]  ;;  %v563_v27 = vld [vmem:[%s2231_s3 + $0x400] sm:$0xff]  ;;  %v564_v28 = vld [vmem:[%s2231_s3 + $0x408] sm:$0xff] }
  0x51   : > { %1420 = vmatpush3.bf16.msra.mxu0 %v1419_v17  ;;  %v1437_v17 = vpack.c.bf16 %v530_v12, %v529_v11  ;;  %v2139_v34 = vld [vmem:[%s1683_s22 + $0x10] sm:$0x3]  ;;  %v1473_v36 = vpack.c.bf16 %v564_v28, %v563_v27  ;;  %v566_v25 = vld [vmem:[%s2231_s3 + $0x418] sm:$0xff]  ;;  %v568_v45 = vld [vmem:[%s2231_s3 + $0x428] sm:$0xff] }
  0x52   : > { %1452 = vmatpush3.bf16.msra.mxu1 %v1451_v21  ;;  %1422 = vmatprep.subr.bf16.mxu0 %v1421_v22  ;;  %v514_v21 = vld [vmem:[%s2231_s3 + $0x278] sm:$0xff]  ;;  %v545_v22 = vld [vmem:[%s2231_s3 + $0x370] sm:$0xff]  ;;  %v424_v39 = vrot.slane %v2139_v34, 1  ;;  %v572_v54 = vld [vmem:[%s2231_s3 + $0x448] sm:$0xff]  ;;  %v431_v63 = vrot.slane %v2139_v34, 2 }
  0x53   : > { %1454 = vmatprep.subr.bf16.mxu1 %v1453_v30  ;;  %v378_v30 = vld [vmem:[%s1677_s20 + $0x10] sm:$0x3]  ;;  %v1439_v33 = vpack.c.bf16 %v514_v21, %v513_v18  ;;  %v1471_v35 = vpack.c.bf16 %v546_v26, %v545_v22  ;;  %v570_v51 = vld [vmem:[%s2231_s3 + $0x438] sm:$0xff]  ;;  %v576_v58 = vld [vmem:[%s2231_s3 + $0x468] sm:$0xff] }
  0x54   : > { %v414_v37 = vrot.slane %v378_v30, 2  ;;  %v407_v41 = vrot.slane %v378_v30, 1  ;;  %v425_v49 = vsel %vm385_vm0, %v422_v52, %v424_v39  ;;  %v569_v50 = vld [vmem:[%s2231_s3 + $0x430] sm:$0xff]  ;;  %v571_v52 = vld [vmem:[%s2231_s3 + $0x440] sm:$0xff]  ;;  %v432_v0 = vsel %vm393_vm1, %v429_v44, %v431_v63 }
  0x55   : > { %1424 = vmatpush3.bf16.msra.mxu0 %v1423_v38  ;;  %v565_v38 = vld [vmem:[%s2231_s3 + $0x410] sm:$0xff] }
  0x56   : > { %1456 = vmatpush3.bf16.msra.mxu1 %v1455_v24  ;;  %1426 = vmatprep.subr.bf16.mxu0 %v1425_v43  ;;  %v1477_v42 = vpack.c.bf16 %v566_v25, %v565_v38  ;;  %v415_v24 = vsel %vm393_vm1, %v412_v29, %v414_v37  ;;  %v567_v43 = vld [vmem:[%s2231_s3 + $0x420] sm:$0xff]  ;;  %v408_v20 = vsel %vm385_vm0, %v405_v32, %v407_v41  ;;  %v573_v19 = vld [vmem:[%s2231_s3 + $0x450] sm:$0xff] }
  0x57   : > { %1458 = vmatprep.subr.bf16.mxu1 %v1457_v48  ;;  %v428_v48 = vrot.slane %v2043_v46, 2  ;;  %v1481_v29 = vpack.c.bf16 %v568_v45, %v567_v43  ;;  %v577_v60 = vld [vmem:[%s2231_s3 + $0x470] sm:$0xff] }
  0x59   : > { %1428 = vmatpush3.bf16.msra.mxu0 %v1427_v55  ;;  %v430_v53 = vsel %vm393_vm1, %v428_v48, %v429_v44  ;;  %v1489_v55 = vpack.c.bf16 %v572_v54, %v571_v52  ;;  %v966_v52 = vld [vmem:[%s2234_s6] sm:$0x1] }
  0x5a   : > { %1460 = vmatpush3.bf16.msra.mxu1 %v1459_v56  ;;  %1430 = vmatprep.subr.bf16.mxu0 %v1429_v57  ;;  %v575_v57 = vld [vmem:[%s2231_s3 + $0x460] sm:$0xff] }
  0x5b   : > { %1462 = vmatprep.subr.bf16.mxu1 %v1461_v61  ;;  %v1497_v59 = vpack.c.bf16 %v576_v58, %v575_v57  ;;  %v578_v61 = vld [vmem:[%s2231_s3 + $0x478] sm:$0xff] }
  0x5c   : > { %v1501_v62 = vpack.c.bf16 %v578_v61, %v577_v60 }
  0x5d   : > { %1432 = vmatpush3.bf16.msra.mxu0 %v1431_v3 }
  0x5e   : > { %1464 = vmatpush3.bf16.msra.mxu1 %v1463_v4  ;;  %1434 = vmatprep.subr.bf16.mxu0 %v1433_v5 }
  0x5f   : > { %1466 = vmatprep.subr.bf16.mxu1 %v1465_v9 }
  0x61   : > { %1436 = vmatpush3.bf16.msra.mxu0 %v1435_v15 }
  0x62   : > { %1468 = vmatpush3.bf16.msra.mxu1 %v1467_v16  ;;  %1438 = vmatprep.subr.bf16.mxu0 %v1437_v17 }
  0x63   : > { %1470 = vmatprep.subr.bf16.mxu1 %v1469_v23 }
  0x65   : > { %1440 = vmatpush3.bf16.msra.mxu0 %v1439_v33 }
  0x66   : > { %1472 = vmatpush3.bf16.msra.mxu1 %v1471_v35  ;;  %1474 = vmatprep.subr.bf16.mxu0 %v1473_v36 }
  0x68   : > { %794 = vmatmul.mubr.f32.vlgmr.msra.gmra.mrb[4].mxu0 %v406_v40 }
  0x69   : > { %1476 = vmatpush3.bf16.msra.mxu0 %v1473_v36  ;;  %869 = vmatmul.mubr.f32.vlgmr.msra.gmra.mrb[4].mxu1 %v2043_v46  ;;  %v1485_v46 = vpack.c.bf16 %v570_v51, %v569_v50  ;;  %v956_v51 = vld [vmem:[%s2233_s5] sm:$0x1] }
  0x6a   : > { %798 = vmatprep.mubr.f32.mxu0 %v415_v24  ;;  %1478 = vmatprep.subr.bf16.mxu0 %v1477_v42 }
  0x6b   : > { %873 = vmatprep.mubr.f32.mxu1 %v425_v49 }
  0x6c   : > { %799 = vmatmul.mubr.f32.gmra.mrb[6].mxu0 %v408_v20 }
  0x6d   : > { %1480 = vmatpush3.bf16.msra.mxu0 %v1477_v42  ;;  %874 = vmatmul.mubr.f32.gmra.mrb[6].mxu1 %v2046_v47  ;;  %v574_v47 = vld [vmem:[%s2231_s3 + $0x458] sm:$0xff] }
  0x6e   : > { %1482 = vmatprep.subr.bf16.mxu0 %v1481_v29  ;;  %1342 = vmatprep.mubr.f32.mxu0 %v430_v53  ;;  %v1493_v56 = vpack.c.bf16 %v574_v47, %v573_v19 }
  0x71   : > { %1484 = vmatpush3.bf16.msra.mxu0 %v1481_v29 }
  0x72   : > { %1486 = vmatprep.subr.bf16.mxu0 %v1485_v46 }
  0x75   : > { %1488 = vmatpush3.bf16.msra.mxu0 %v1485_v46 }
  0x76   : > { %1490 = vmatprep.subr.bf16.mxu0 %v1489_v55 }
  0x79   : > { %1492 = vmatpush3.bf16.msra.mxu0 %v1489_v55 }
  0x7a   : > { %1494 = vmatprep.subr.bf16.mxu0 %v1493_v56 }
  0x7d   : > { %1496 = vmatpush3.bf16.msra.mxu0 %v1493_v56 }
  0x7e   : > { %1498 = vmatprep.subr.bf16.mxu0 %v1497_v59 }
  0x81   : > { %1500 = vmatpush3.bf16.msra.mxu0 %v1497_v59 }
  0x82   : > { %1502 = vmatprep.subr.bf16.mxu0 %v1501_v62 }
  0x85   : > { %1504 = vmatpush3.bf16.msra.mxu0 %v1501_v62 }
  0x88   : > { %1343 = vmatmul.mubr.f32.vlgmr.msra.gmra.mrb[8].mxu0 %v432_v0 }
 0x11b   : > { %v1172_v1 = vpop.f32.mrb[0].mxu0 }
 0x11c   : > { %v1210_v2 = vpop.f32.mrb[0].mxu1  ;;  %v1173_v3 = vpop.f32.mrb[1].mxu0 }
 0x11d   : > { %v1174_v4 = vadd.f32 %v1173_v3, %v1172_v1  ;;  %v1211_v5 = vpop.f32.mrb[1].mxu1 }
 0x11e   : > { %v1212_v6 = vadd.f32 %v1211_v5, %v1210_v2 }
 0x120   : > { %v721_v7 = vadd.f32 %v1212_v6, %v1174_v4  ;;  %v1213_v9 = vpop.f32.mrb[2].mxu1 }
 0x121   : > { %v1214_v12 = vpop.f32.mrb[3].mxu1 }
 0x122   : > { %v1175_v8 = vpop.f32.mrb[2].mxu0  ;;  %v1215_v13 = vadd.f32 %v1214_v12, %v1213_v9 }
 0x123   : > { %v1176_v10 = vpop.f32.mrb[3].mxu0 }
 0x124   : > { %v1177_v11 = vadd.f32 %v1176_v10, %v1175_v8 }
 0x126   : > { %v726_v14 = vadd.f32 %v1215_v13, %v1177_v11 }
 0x13b   : > { %v1248_v15 = vpop.f32.mrb[4].mxu0 }
 0x13c   : > { %v1249_v16 = vpop.f32.mrb[5].mxu0  ;;  %v1286_v17 = vpop.f32.mrb[4].mxu1 }
 0x13d   : > { %v1250_v18 = vadd.f32 %v1249_v16, %v1248_v15  ;;  %v1287_v21 = vpop.f32.mrb[5].mxu1 }
 0x13e   : > { %v1288_v22 = vadd.f32 %v1287_v21, %v1286_v17 }
 0x13f   : > { %v796_v23 = vadd.f32 %v1250_v18, %v721_v7  ;;  %v1251_v26 = vpop.f32.mrb[6].mxu0 }
 0x140   : > { %v1252_v27 = vpop.f32.mrb[7].mxu0  ;;  %v1289_v28 = vpop.f32.mrb[6].mxu1 }
 0x141   : > { %v1253_v30 = vadd.f32 %v1252_v27, %v1251_v26  ;;  %v1290_v31 = vpop.f32.mrb[7].mxu1  ;;  %v871_v32 = vadd.f32 %v1288_v22, %v796_v23 }
 0x142   : > { %v1291_v33 = vadd.f32 %v1290_v31, %v1289_v28 }
 0x143   : > { %v801_v34 = vadd.f32 %v1253_v30, %v726_v14 }
 0x145   : > { %v876_v35 = vadd.f32 %v1291_v33, %v801_v34 }
 0x15b   : > { %v1344_v36 = vpop.f32.mrb[8].mxu0 }
 0x15c   : > { %v951_v37 = vadd.f32 %v1344_v36, %v876_v35  ;;  %v945_v38 = vpop.f32.mrb[9].mxu0 }
 0x15d   : > { %v946_v25 = vadd.f32 %v945_v38, %v871_v32 }
 0x15e   : > { %955 = vst [vmem:[%s1688_s17 + $0x8] sm:$0xff] %v951_v37  ;;  %v968_v39 = vmul.f32 %v951_v37, %v951_v37 }
 0x15f   : > { %954 = vst [vmem:[%s1688_s17] sm:$0xff] %v946_v25  ;;  %v957_v40 = vadd.f32 %v951_v37, %v946_v25  ;;  %v967_v41 = vmul.f32 %v946_v25, %v946_v25 }
 0x161   : > { %v958_v42 = vrot.slane %v957_v40, 4  ;;  %v969_v24 = vadd.f32 %v968_v39, %v967_v41 }
 0x163   : > { %v959_v43 = vadd.f32 %v958_v42, %v957_v40  ;;  %v970_v45 = vrot.slane %v969_v24, 4 }
 0x165   : > { %v960_v48 = vrot.slane %v959_v43, 2  ;;  %v971_v44 = vadd.f32 %v970_v45, %v969_v24 }
 0x167   : > { %v961_v49 = vadd.f32 %v960_v48, %v959_v43  ;;  %v972_v20 = vrot.slane %v971_v44, 2 }
 0x169   : > { %v962_v29 = vrot.slane %v961_v49, 1  ;;  %v973_v50 = vadd.f32 %v972_v20, %v971_v44 }
 0x16b   : > { %v963_v53 = vadd.f32 %v962_v29, %v961_v49  ;;  %v974_v46 = vrot.slane %v973_v50, 1 }
 0x16d   : > { %v964_v54 = vadd.f32 %v963_v53, %v956_v51  ;;  %v975_v55 = vadd.f32 %v974_v46, %v973_v50 }
 0x16f   : > { %965 = vst [vmem:[%s2233_s5] sm:$0x1] %v964_v54  ;;  %v976_v19 = vadd.f32 %v975_v55, %v966_v52 }
 0x171   : > { %977 = vst [vmem:[%s2234_s6] sm:$0x1] %v976_v19 }
 0x172 PF: > { %s17_s25 = sadd.s32 1, %s1588_s25   ;;  %s2238_s30 = sld [smem:[#allocation2_spill]] }
 0x173   : > { %p14_p13 = scmp.ge.s32.totalorder %s17_s25, 34   ;;  %s2239_s21 = smov %s1580_s23 }
 0x174   : > { %s2240_s22 = smov %s1584_s24  ;;  %s2241_s23 = smov %s2244_s26 }
 0x175   :  { %16 = sbr.rel (!%p14_p13) target bundleno = 3 (0x3), region = 92 }
 0x178   : > { %s2242_s24 = smov %s2238_s30 }

// kernel: con_bn_leak_5set_forward.14
= control target key start
LH: loop header
LB: loop body
LE: loop exit
PB: predicated region body
PF: predicated region fallthrough
CT: control target
= control target key end

     0   :  { %s918_s15 = smov 0   ;;  %s1147_s0 = inlined_call_operand.vmem [shape: f32[512,128], index: 0, kind: input, shape index: {}]   ;;  %s1148_s1 = inlined_call_operand.vmem [shape: f32[128,128], index: 1, kind: input, shape index: {}]   ;;  %s1149_s2 = inlined_call_operand.vmem [shape: f32[512,128], index: 2, kind: output, shape index: {0}]   ;;  %s1150_s3 = inlined_call_operand.vmem [shape: f32[1,128], index: 3, kind: output, shape index: {1}]   ;;  %s1151_s4 = inlined_call_operand.vmem [shape: f32[1,128], index: 4, kind: output, shape index: {2}]  }
   0x1 LB: > { %s687_s16 = sadd.s32 4294967295, %s890_s15   ;;  %p691_p0 = scmp.ge.s32.totalorder %s890_s15, 1  ;;  %s890_s15 = sphi %s918_s15, %s15_s15  }
   0x2   : > { %p158_p1 = scmp.lt.s32.totalorder %s890_s15, 3 }
   0x4   : > { %p159_p2 = pnand %p691_p0, %p158_p1 }
   0x5   : > { %s692_s17 = sshll.u32 (!%p159_p2), %s687_s16, 5  ;;  %p696_p4 = scmp.ne.s32.totalorder (!%p159_p2), %s687_s16, 0 }
   0x6   : > { %162 = sbr.rel (%p159_p2) target bundleno = 349 (0x15d), region = 28  ;;  %p185_p3 = scmp.lt.s32.totalorder (!%p159_p2), %s692_s17, 63 }
   0xd   : > { %s1153_s17 = smov (!%p185_p3, %s692_s17), 63  ;;  %199 = sbr.rel (%p696_p4) target bundleno = 20 (0x14), region = 32 }
   0xe   : > { %s693_s18 = sshll.u32 %s1153_s17, 3  ;;  %v892_v0 = vmov (!%p696_p4), 0.0  }
   0xf   : > { %s929_s21 = scalar_lea.vmem %s1147_s0, %s693_s18  ;;  %s934_s24 = scalar_lea.vmem %s1149_s2, %s693_s18  ;;  %200 = vst [vmem:[%s1150_s3] sm:$0x1] (!%p696_p4), %v892_v0  ;;  %201 = vst [vmem:[%s1151_s4] sm:$0x1] (!%p696_p4), %v892_v0 }
  0x14 PF: > { %v234_v1 = vld [vmem:[%s1148_s1] sm:$0xff]  ;;  %v235_v2 = vld [vmem:[%s1148_s1 + $0x8] sm:$0xff]  ;;  %v236_v3 = vld [vmem:[%s1148_s1 + $0x10] sm:$0xff] }
  0x15   : > { %v827_v4 = vpack.c.bf16 %v235_v2, %v234_v1  ;;  %v237_v5 = vld [vmem:[%s1148_s1 + $0x18] sm:$0xff]  ;;  %v238_v7 = vld [vmem:[%s1148_s1 + $0x20] sm:$0xff]  ;;  %v239_v8 = vld [vmem:[%s1148_s1 + $0x28] sm:$0xff] }
  0x16   : > { %v831_v6 = vpack.c.bf16 %v237_v5, %v236_v3  ;;  %v835_v9 = vpack.c.bf16 %v239_v8, %v238_v7  ;;  %v202_v10 = vld [vmem:[%s929_s21] sm:$0xff]  ;;  %v240_v11 = vld [vmem:[%s1148_s1 + $0x30] sm:$0xff]  ;;  %v241_v12 = vld [vmem:[%s1148_s1 + $0x38] sm:$0xff] }
  0x17   : > { %828 = vmatprep.subr.bf16.mxu0 %v827_v4  ;;  %859 = vmatprep.subr.bf16.mxu1 %v827_v4  ;;  %v839_v13 = vpack.c.bf16 %v241_v12, %v240_v11  ;;  %v242_v14 = vld [vmem:[%s1148_s1 + $0x40] sm:$0xff]  ;;  %v243_v15 = vld [vmem:[%s1148_s1 + $0x48] sm:$0xff]  ;;  %v244_v18 = vld [vmem:[%s1148_s1 + $0x50] sm:$0xff] }
  0x18   : > { %830 = vmatpush3.bf16.msra.mxu0 %v827_v4  ;;  %867 = vmatpush3.bf16.msra.mxu1 %v827_v4  ;;  %v218_v16 = vld [vmem:[%s929_s21 + $0x80] sm:$0xff]  ;;  %v843_v17 = vpack.c.bf16 %v243_v15, %v242_v14  ;;  %v245_v19 = vld [vmem:[%s1148_s1 + $0x58] sm:$0xff]  ;;  %v247_v22 = vld [vmem:[%s1148_s1 + $0x68] sm:$0xff] }
  0x19   : > { %832 = vmatprep.subr.bf16.mxu0 %v831_v6  ;;  %860 = vmatprep.subr.bf16.mxu1 %v831_v6  ;;  %v847_v20 = vpack.c.bf16 %v245_v19, %v244_v18  ;;  %v246_v21 = vld [vmem:[%s1148_s1 + $0x60] sm:$0xff]  ;;  %v248_v24 = vld [vmem:[%s1148_s1 + $0x70] sm:$0xff]  ;;  %v249_v25 = vld [vmem:[%s1148_s1 + $0x78] sm:$0xff] }
  0x1a   : > { %779 = vmatprep.mubr.f32.mxu0 %v202_v10  ;;  %803 = vmatprep.mubr.f32.mxu1 %v218_v16  ;;  %v851_v23 = vpack.c.bf16 %v247_v22, %v246_v21  ;;  %v855_v26 = vpack.c.bf16 %v249_v25, %v248_v24  ;;  %v203_v27 = vld [vmem:[%s929_s21 + $0x8] sm:$0xff]  ;;  %v204_v29 = vld [vmem:[%s929_s21 + $0x10] sm:$0xff]  ;;  %v205_v31 = vld [vmem:[%s929_s21 + $0x18] sm:$0xff] }
  0x1b   : > { %v219_v28 = vld [vmem:[%s929_s21 + $0x88] sm:$0xff]  ;;  %v220_v30 = vld [vmem:[%s929_s21 + $0x90] sm:$0xff]  ;;  %v221_v32 = vld [vmem:[%s929_s21 + $0x98] sm:$0xff] }
  0x1c   : > { %834 = vmatpush3.bf16.msra.mxu0 %v831_v6  ;;  %868 = vmatpush3.bf16.msra.mxu1 %v831_v6  ;;  %v206_v33 = vld [vmem:[%s929_s21 + $0x20] sm:$0xff]  ;;  %v207_v35 = vld [vmem:[%s929_s21 + $0x28] sm:$0xff]  ;;  %v208_v37 = vld [vmem:[%s929_s21 + $0x30] sm:$0xff] }
  0x1d   : > { %836 = vmatprep.subr.bf16.mxu0 %v835_v9  ;;  %861 = vmatprep.subr.bf16.mxu1 %v835_v9  ;;  %v222_v34 = vld [vmem:[%s929_s21 + $0xa0] sm:$0xff]  ;;  %v223_v36 = vld [vmem:[%s929_s21 + $0xa8] sm:$0xff]  ;;  %v224_v38 = vld [vmem:[%s929_s21 + $0xb0] sm:$0xff] }
  0x1e   : > { %v209_v39 = vld [vmem:[%s929_s21 + $0x38] sm:$0xff]  ;;  %v210_v41 = vld [vmem:[%s929_s21 + $0x40] sm:$0xff]  ;;  %v211_v43 = vld [vmem:[%s929_s21 + $0x48] sm:$0xff] }
  0x1f   : > { %v225_v40 = vld [vmem:[%s929_s21 + $0xb8] sm:$0xff]  ;;  %v226_v42 = vld [vmem:[%s929_s21 + $0xc0] sm:$0xff]  ;;  %v227_v44 = vld [vmem:[%s929_s21 + $0xc8] sm:$0xff] }
  0x20   : > { %838 = vmatpush3.bf16.msra.mxu0 %v835_v9  ;;  %869 = vmatpush3.bf16.msra.mxu1 %v835_v9  ;;  %v212_v45 = vld [vmem:[%s929_s21 + $0x50] sm:$0xff]  ;;  %v213_v47 = vld [vmem:[%s929_s21 + $0x58] sm:$0xff]  ;;  %v214_v49 = vld [vmem:[%s929_s21 + $0x60] sm:$0xff] }
  0x21   : > { %840 = vmatprep.subr.bf16.mxu0 %v839_v13  ;;  %862 = vmatprep.subr.bf16.mxu1 %v839_v13  ;;  %v228_v46 = vld [vmem:[%s929_s21 + $0xd0] sm:$0xff]  ;;  %v229_v48 = vld [vmem:[%s929_s21 + $0xd8] sm:$0xff]  ;;  %v230_v50 = vld [vmem:[%s929_s21 + $0xe0] sm:$0xff] }
  0x22   : > { %v215_v51 = vld [vmem:[%s929_s21 + $0x68] sm:$0xff]  ;;  %v216_v53 = vld [vmem:[%s929_s21 + $0x70] sm:$0xff]  ;;  %v217_v55 = vld [vmem:[%s929_s21 + $0x78] sm:$0xff] }
  0x23   : > { %v231_v52 = vld [vmem:[%s929_s21 + $0xe8] sm:$0xff]  ;;  %v232_v54 = vld [vmem:[%s929_s21 + $0xf0] sm:$0xff]  ;;  %v233_v56 = vld [vmem:[%s929_s21 + $0xf8] sm:$0xff] }
  0x24   : > { %842 = vmatpush3.bf16.msra.mxu0 %v839_v13  ;;  %870 = vmatpush3.bf16.msra.mxu1 %v839_v13 }
  0x25   : > { %844 = vmatprep.subr.bf16.mxu0 %v843_v17  ;;  %863 = vmatprep.subr.bf16.mxu1 %v843_v17 }
  0x28   : > { %846 = vmatpush3.bf16.msra.mxu0 %v843_v17  ;;  %871 = vmatpush3.bf16.msra.mxu1 %v843_v17 }
  0x29   : > { %848 = vmatprep.subr.bf16.mxu0 %v847_v20  ;;  %864 = vmatprep.subr.bf16.mxu1 %v847_v20 }
  0x2c   : > { %850 = vmatpush3.bf16.msra.mxu0 %v847_v20  ;;  %872 = vmatpush3.bf16.msra.mxu1 %v847_v20 }
  0x2d   : > { %852 = vmatprep.subr.bf16.mxu0 %v851_v23  ;;  %865 = vmatprep.subr.bf16.mxu1 %v851_v23 }
  0x30   : > { %854 = vmatpush3.bf16.msra.mxu0 %v851_v23  ;;  %873 = vmatpush3.bf16.msra.mxu1 %v851_v23 }
  0x31   : > { %856 = vmatprep.subr.bf16.mxu0 %v855_v26  ;;  %866 = vmatprep.subr.bf16.mxu1 %v855_v26 }
  0x34   : > { %858 = vmatpush3.bf16.msra.mxu0 %v855_v26  ;;  %874 = vmatpush3.bf16.msra.mxu1 %v855_v26 }
  0x37   : > { %780 = vmatmul.mubr.f32.vlgmr.msra.gmra.mrb[0].mxu0 %v203_v27  ;;  %804 = vmatmul.mubr.f32.vlgmr.msra.gmra.mrb[0].mxu1 %v219_v28 }
  0x38   : > { %782 = vmatprep.mubr.f32.mxu0 %v204_v29  ;;  %806 = vmatprep.mubr.f32.mxu1 %v220_v30 }
  0x3b   : > { %783 = vmatmul.mubr.f32.gmra.mrb[2].mxu0 %v205_v31  ;;  %807 = vmatmul.mubr.f32.gmra.mrb[2].mxu1 %v221_v32 }
  0x3c   : > { %785 = vmatprep.mubr.f32.mxu0 %v206_v33  ;;  %809 = vmatprep.mubr.f32.mxu1 %v222_v34 }
  0x3f   : > { %786 = vmatmul.mubr.f32.gmra.mrb[4].mxu0 %v207_v35  ;;  %810 = vmatmul.mubr.f32.gmra.mrb[4].mxu1 %v223_v36 }
  0x40   : > { %788 = vmatprep.mubr.f32.mxu0 %v208_v37  ;;  %812 = vmatprep.mubr.f32.mxu1 %v224_v38 }
  0x43   : > { %789 = vmatmul.mubr.f32.gmra.mrb[6].mxu0 %v209_v39  ;;  %813 = vmatmul.mubr.f32.gmra.mrb[6].mxu1 %v225_v40 }
  0x44   : > { %791 = vmatprep.mubr.f32.mxu0 %v210_v41  ;;  %815 = vmatprep.mubr.f32.mxu1 %v226_v42 }
  0x47   : > { %792 = vmatmul.mubr.f32.gmra.mrb[8].mxu0 %v211_v43  ;;  %816 = vmatmul.mubr.f32.gmra.mrb[8].mxu1 %v227_v44 }
  0x48   : > { %794 = vmatprep.mubr.f32.mxu0 %v212_v45  ;;  %818 = vmatprep.mubr.f32.mxu1 %v228_v46 }
  0x4b   : > { %795 = vmatmul.mubr.f32.gmra.mrb[10].mxu0 %v213_v47  ;;  %819 = vmatmul.mubr.f32.gmra.mrb[10].mxu1 %v229_v48 }
  0x4c   : > { %797 = vmatprep.mubr.f32.mxu0 %v214_v49  ;;  %821 = vmatprep.mubr.f32.mxu1 %v230_v50 }
  0x4f   : > { %798 = vmatmul.mubr.f32.gmra.mrb[12].mxu0 %v215_v51  ;;  %822 = vmatmul.mubr.f32.gmra.mrb[12].mxu1 %v231_v52 }
  0x50   : > { %800 = vmatprep.mubr.f32.mxu0 %v216_v53  ;;  %824 = vmatprep.mubr.f32.mxu1 %v232_v54 }
  0x53   : > { %801 = vmatmul.mubr.f32.gmra.mrb[14].mxu0 %v217_v55  ;;  %825 = vmatmul.mubr.f32.gmra.mrb[14].mxu1 %v233_v56 }
 0x10a   : > { %v781_v57 = vpop.f32.mrb[0].mxu0  ;;  %v1022_v58 = vpop.f32.mrb[0].mxu1 }
 0x10b   : > { %476 = vst [vmem:[%s934_s24 + $0x8] sm:$0xff] %v781_v57  ;;  %v549_v59 = vmul.f32 %v781_v57, %v781_v57  ;;  %v316_v60 = vpop.f32.mrb[1].mxu0  ;;  %492 = vst [vmem:[%s934_s24 + $0x88] sm:$0xff] %v1022_v58  ;;  %v1027_v61 = vpop.f32.mrb[1].mxu1 }
 0x10c   : > { %475 = vst [vmem:[%s934_s24] sm:$0xff] %v316_v60  ;;  %v508_v62 = vadd.f32 %v781_v57, %v316_v60  ;;  %v548_v63 = vmul.f32 %v316_v60, %v316_v60  ;;  %491 = vst [vmem:[%s934_s24 + $0x80] sm:$0xff] %v1027_v61 }
 0x10e   : > { %v580_v0 = vadd.f32 %v549_v59, %v548_v63  ;;  %v784_v1 = vpop.f32.mrb[2].mxu0  ;;  %v1032_v2 = vpop.f32.mrb[2].mxu1 }
 0x10f   : > { %478 = vst [vmem:[%s934_s24 + $0x18] sm:$0xff] %v784_v1  ;;  %v326_v3 = vpop.f32.mrb[3].mxu0  ;;  %494 = vst [vmem:[%s934_s24 + $0x98] sm:$0xff] %v1032_v2  ;;  %v1037_v4 = vpop.f32.mrb[3].mxu1  ;;  %v551_v7 = vmul.f32 %v784_v1, %v784_v1 }
 0x110   : > { %477 = vst [vmem:[%s934_s24 + $0x10] sm:$0xff] %v326_v3  ;;  %v509_v5 = vadd.f32 %v508_v62, %v326_v3  ;;  %v550_v6 = vmul.f32 %v326_v3, %v326_v3  ;;  %493 = vst [vmem:[%s934_s24 + $0x90] sm:$0xff] %v1037_v4 }
 0x112   : > { %v581_v8 = vadd.f32 %v580_v0, %v550_v6  ;;  %v787_v9 = vpop.f32.mrb[4].mxu0  ;;  %v510_v10 = vadd.f32 %v784_v1, %v509_v5  ;;  %v1042_v11 = vpop.f32.mrb[4].mxu1 }
 0x113   : > { %480 = vst [vmem:[%s934_s24 + $0x28] sm:$0xff] %v787_v9  ;;  %v336_v12 = vpop.f32.mrb[5].mxu0  ;;  %496 = vst [vmem:[%s934_s24 + $0xa8] sm:$0xff] %v1042_v11  ;;  %v1047_v13 = vpop.f32.mrb[5].mxu1  ;;  %v553_v17 = vmul.f32 %v787_v9, %v787_v9 }
 0x114   : > { %479 = vst [vmem:[%s934_s24 + $0x20] sm:$0xff] %v336_v12  ;;  %v511_v14 = vadd.f32 %v510_v10, %v336_v12  ;;  %v552_v15 = vmul.f32 %v336_v12, %v336_v12  ;;  %v582_v16 = vadd.f32 %v581_v8, %v551_v7  ;;  %495 = vst [vmem:[%s934_s24 + $0xa0] sm:$0xff] %v1047_v13 }
 0x115   : > { %v564_v10 = vmul.f32 %v1027_v61, %v1027_v61 }
 0x116   : > { %v583_v18 = vadd.f32 %v582_v16, %v552_v15  ;;  %v790_v19 = vpop.f32.mrb[6].mxu0  ;;  %v512_v20 = vadd.f32 %v787_v9, %v511_v14  ;;  %v1052_v21 = vpop.f32.mrb[6].mxu1  ;;  %v565_v15 = vmul.f32 %v1022_v58, %v1022_v58 }
 0x117   : > { %482 = vst [vmem:[%s934_s24 + $0x38] sm:$0xff] %v790_v19  ;;  %v346_v22 = vpop.f32.mrb[7].mxu0  ;;  %498 = vst [vmem:[%s934_s24 + $0xb8] sm:$0xff] %v1052_v21  ;;  %v1057_v23 = vpop.f32.mrb[7].mxu1  ;;  %v555_v27 = vmul.f32 %v790_v19, %v790_v19 }
 0x118   : > { %481 = vst [vmem:[%s934_s24 + $0x30] sm:$0xff] %v346_v22  ;;  %v513_v24 = vadd.f32 %v512_v20, %v346_v22  ;;  %v554_v25 = vmul.f32 %v346_v22, %v346_v22  ;;  %v584_v26 = vadd.f32 %v583_v18, %v553_v17  ;;  %497 = vst [vmem:[%s934_s24 + $0xb0] sm:$0xff] %v1057_v23 }
 0x119   : > { %v566_v18 = vmul.f32 %v1037_v4, %v1037_v4  ;;  %v567_v22 = vmul.f32 %v1032_v2, %v1032_v2 }
 0x11a   : > { %v585_v28 = vadd.f32 %v584_v26, %v554_v25  ;;  %v793_v29 = vpop.f32.mrb[8].mxu0  ;;  %v514_v30 = vadd.f32 %v790_v19, %v513_v24  ;;  %v1062_v31 = vpop.f32.mrb[8].mxu1 }
 0x11b   : > { %484 = vst [vmem:[%s934_s24 + $0x48] sm:$0xff] %v793_v29  ;;  %v356_v32 = vpop.f32.mrb[9].mxu0  ;;  %500 = vst [vmem:[%s934_s24 + $0xc8] sm:$0xff] %v1062_v31  ;;  %v1067_v33 = vpop.f32.mrb[9].mxu1  ;;  %v557_v37 = vmul.f32 %v793_v29, %v793_v29 }
 0x11c   : > { %483 = vst [vmem:[%s934_s24 + $0x40] sm:$0xff] %v356_v32  ;;  %v515_v34 = vadd.f32 %v514_v30, %v356_v32  ;;  %v556_v35 = vmul.f32 %v356_v32, %v356_v32  ;;  %v586_v36 = vadd.f32 %v585_v28, %v555_v27  ;;  %499 = vst [vmem:[%s934_s24 + $0xc0] sm:$0xff] %v1067_v33 }
 0x11e   : > { %v587_v38 = vadd.f32 %v586_v36, %v556_v35  ;;  %v796_v39 = vpop.f32.mrb[10].mxu0  ;;  %v516_v40 = vadd.f32 %v793_v29, %v515_v34  ;;  %v1072_v41 = vpop.f32.mrb[10].mxu1 }
 0x11f   : > { %486 = vst [vmem:[%s934_s24 + $0x58] sm:$0xff] %v796_v39  ;;  %v366_v42 = vpop.f32.mrb[11].mxu0  ;;  %502 = vst [vmem:[%s934_s24 + $0xd8] sm:$0xff] %v1072_v41  ;;  %v1077_v43 = vpop.f32.mrb[11].mxu1  ;;  %v559_v47 = vmul.f32 %v796_v39, %v796_v39 }
 0x120   : > { %485 = vst [vmem:[%s934_s24 + $0x50] sm:$0xff] %v366_v42  ;;  %v517_v44 = vadd.f32 %v516_v40, %v366_v42  ;;  %v558_v45 = vmul.f32 %v366_v42, %v366_v42  ;;  %v588_v46 = vadd.f32 %v587_v38, %v557_v37  ;;  %501 = vst [vmem:[%s934_s24 + $0xd0] sm:$0xff] %v1077_v43 }
 0x122   : > { %v589_v48 = vadd.f32 %v588_v46, %v558_v45  ;;  %v799_v49 = vpop.f32.mrb[12].mxu0  ;;  %v518_v50 = vadd.f32 %v796_v39, %v517_v44  ;;  %v1082_v51 = vpop.f32.mrb[12].mxu1 }
 0x123   : > { %488 = vst [vmem:[%s934_s24 + $0x68] sm:$0xff] %v799_v49  ;;  %v376_v52 = vpop.f32.mrb[13].mxu0  ;;  %504 = vst [vmem:[%s934_s24 + $0xe8] sm:$0xff] %v1082_v51  ;;  %v456_v53 = vpop.f32.mrb[13].mxu1  ;;  %v561_v57 = vmul.f32 %v799_v49, %v799_v49 }
 0x124   : > { %487 = vst [vmem:[%s934_s24 + $0x60] sm:$0xff] %v376_v52  ;;  %v519_v54 = vadd.f32 %v518_v50, %v376_v52  ;;  %v560_v55 = vmul.f32 %v376_v52, %v376_v52  ;;  %v590_v56 = vadd.f32 %v589_v48, %v559_v47  ;;  %503 = vst [vmem:[%s934_s24 + $0xe0] sm:$0xff] %v456_v53 }
 0x125   : > { %v577_v48 = vmul.f32 %v1082_v51, %v1082_v51 }
 0x126   : > { %v591_v59 = vadd.f32 %v590_v56, %v560_v55  ;;  %v802_v60 = vpop.f32.mrb[14].mxu0  ;;  %v520_v62 = vadd.f32 %v799_v49, %v519_v54  ;;  %v826_v63 = vpop.f32.mrb[14].mxu1 }
 0x127   : > { %490 = vst [vmem:[%s934_s24 + $0x78] sm:$0xff] %v802_v60  ;;  %v386_v0 = vpop.f32.mrb[15].mxu0  ;;  %506 = vst [vmem:[%s934_s24 + $0xf8] sm:$0xff] %v826_v63  ;;  %v466_v1 = vpop.f32.mrb[15].mxu1  ;;  %v563_v7 = vmul.f32 %v802_v60, %v802_v60 }
 0x128   : > { %489 = vst [vmem:[%s934_s24 + $0x70] sm:$0xff] %v386_v0  ;;  %v521_v3 = vadd.f32 %v520_v62, %v386_v0  ;;  %v562_v5 = vmul.f32 %v386_v0, %v386_v0  ;;  %v592_v6 = vadd.f32 %v591_v59, %v561_v57  ;;  %505 = vst [vmem:[%s934_s24 + $0xf0] sm:$0xff] %v466_v1 }
 0x129   : > { %v578_v50 = vmul.f32 %v466_v1, %v466_v1 }
 0x12a   : > { %v522_v8 = vadd.f32 %v802_v60, %v521_v3  ;;  %v593_v9 = vadd.f32 %v592_v6, %v562_v5 }
 0x12c   : > { %v594_v12 = vadd.f32 %v593_v9, %v563_v7  ;;  %v523_v14 = vadd.f32 %v522_v8, %v1027_v61  ;;  %v568_v61 = vmul.f32 %v1047_v13, %v1047_v13 }
 0x12e   : > { %v595_v16 = vadd.f32 %v594_v12, %v564_v10  ;;  %v524_v17 = vadd.f32 %v1022_v58, %v523_v14  ;;  %v569_v58 = vmul.f32 %v1042_v11, %v1042_v11 }
 0x130   : > { %v525_v19 = vadd.f32 %v524_v17, %v1037_v4  ;;  %v596_v20 = vadd.f32 %v595_v16, %v565_v15  ;;  %v570_v4 = vmul.f32 %v1057_v23, %v1057_v23 }
 0x132   : > { %v597_v24 = vadd.f32 %v596_v20, %v566_v18  ;;  %v526_v25 = vadd.f32 %v1032_v2, %v525_v19  ;;  %v571_v2 = vmul.f32 %v1052_v21, %v1052_v21 }
 0x134   : > { %v527_v26 = vadd.f32 %v526_v25, %v1047_v13  ;;  %v598_v27 = vadd.f32 %v597_v24, %v567_v22  ;;  %v572_v13 = vmul.f32 %v1067_v33, %v1067_v33 }
 0x136   : > { %v599_v28 = vadd.f32 %v598_v27, %v568_v61  ;;  %v528_v29 = vadd.f32 %v1042_v11, %v527_v26  ;;  %v573_v11 = vmul.f32 %v1062_v31, %v1062_v31 }
 0x138   : > { %v529_v30 = vadd.f32 %v528_v29, %v1057_v23  ;;  %v600_v32 = vadd.f32 %v599_v28, %v569_v58  ;;  %v574_v23 = vmul.f32 %v1077_v43, %v1077_v43 }
 0x13a   : > { %v601_v34 = vadd.f32 %v600_v32, %v570_v4  ;;  %v530_v35 = vadd.f32 %v1052_v21, %v529_v30  ;;  %v575_v21 = vmul.f32 %v1072_v41, %v1072_v41 }
 0x13c   : > { %v531_v36 = vadd.f32 %v530_v35, %v1067_v33  ;;  %v602_v37 = vadd.f32 %v601_v34, %v571_v2  ;;  %v576_v33 = vmul.f32 %v456_v53, %v456_v53 }
 0x13e   : > { %v603_v38 = vadd.f32 %v602_v37, %v572_v13  ;;  %v532_v39 = vadd.f32 %v1062_v31, %v531_v36 }
 0x140   : > { %v533_v40 = vadd.f32 %v532_v39, %v1077_v43  ;;  %v604_v42 = vadd.f32 %v603_v38, %v573_v11  ;;  %v579_v43 = vmul.f32 %v826_v63, %v826_v63 }
 0x142   : > { %v605_v44 = vadd.f32 %v604_v42, %v574_v23  ;;  %v534_v45 = vadd.f32 %v1072_v41, %v533_v40 }
 0x144   : > { %v535_v46 = vadd.f32 %v534_v45, %v456_v53  ;;  %v606_v47 = vadd.f32 %v605_v44, %v575_v21 }
 0x146   : > { %v607_v49 = vadd.f32 %v606_v47, %v576_v33  ;;  %v536_v31 = vadd.f32 %v1082_v51, %v535_v46  ;;  %v507_v51 = vld [vmem:[%s1150_s3] sm:$0x1] }
 0x148   : > { %v537_v52 = vadd.f32 %v536_v31, %v466_v1  ;;  %v608_v54 = vadd.f32 %v607_v49, %v577_v48 }
 0x14a   : > { %v538_v55 = vadd.f32 %v826_v63, %v537_v52  ;;  %v609_v56 = vadd.f32 %v608_v54, %v578_v50  ;;  %v547_v63 = vld [vmem:[%s1151_s4] sm:$0x1] }
 0x14c   : > { %v539_v57 = vrot.slane %v538_v55, 4  ;;  %v610_v59 = vadd.f32 %v609_v56, %v579_v43 }
 0x14e   : > { %v540_v60 = vadd.f32 %v539_v57, %v538_v55  ;;  %v611_v62 = vrot.slane %v610_v59, 4 }
 0x150   : > { %v541_v41 = vrot.slane %v540_v60, 2  ;;  %v612_v0 = vadd.f32 %v611_v62, %v610_v59 }
 0x152   : > { %v542_v53 = vadd.f32 %v541_v41, %v540_v60  ;;  %v613_v3 = vrot.slane %v612_v0, 2 }
 0x154   : > { %v543_v5 = vrot.slane %v542_v53, 1  ;;  %v614_v6 = vadd.f32 %v613_v3, %v612_v0 }
 0x156   : > { %v544_v7 = vadd.f32 %v543_v5, %v542_v53  ;;  %v615_v1 = vrot.slane %v614_v6, 1 }
 0x158   : > { %v545_v8 = vadd.f32 %v544_v7, %v507_v51  ;;  %v616_v9 = vadd.f32 %v615_v1, %v614_v6 }
 0x15a   : > { %546 = vst [vmem:[%s1150_s3] sm:$0x1] %v545_v8  ;;  %v617_v10 = vadd.f32 %v616_v9, %v547_v63 }
 0x15c   : > { %618 = vst [vmem:[%s1151_s4] sm:$0x1] %v617_v10 }
 0x15d PF: > { %s15_s15 = sadd.s32 1, %s890_s15  }
 0x15e   : > { %p12_p5 = scmp.ge.s32.totalorder %s15_s15, 4  }
 0x160   :  { %14 = sbr.rel (!%p12_p5) target bundleno = 1 (0x1), region = 78 }

</bundles_post_ra>
